<compile_context>
chip_gen: v7x
topology: tpu7x:2x2x1
jax: 0.10.0
libtpu: 0.0.40
codegen_flags: <defaults>
</compile_context>

<pallas_src>
import functools

import jax
import jax.numpy as jnp
from jax import lax
from jax.experimental import pallas as pl
from jax.experimental.pallas import tpu as pltpu


# ----------------------------- tiling helpers -------------------------------

def _row_tile(n, target):
    """Largest tile <= target that divides n and is a multiple of 8 (else n)."""
    if n <= target:
        return n
    t = (target // 8) * 8
    while t >= 8:
        if n % t == 0:
            return t
        t -= 8
    return n


def _col_tile(n, target):
    """Largest tile <= target that divides n and is a multiple of 128 (else n)."""
    if n <= target or n % 128 != 0:
        return n
    t = (target // 128) * 128
    while t >= 128:
        if n % t == 0:
            return t
        t -= 128
    return n


# --------------------------- kernel 1: QKV proj ------------------------------

def _qkv_kernel(x_ref, wq_ref, bq_ref, wk_ref, bk_ref, wv_ref, bv_ref,
                q_ref, k_ref, v_ref, *, compute_dtype):
    x = x_ref[...].astype(compute_dtype)
    q_ref[...] = jnp.dot(x, wq_ref[...].astype(compute_dtype),
                         preferred_element_type=jnp.float32) + bq_ref[...]
    k_ref[...] = jnp.dot(x, wk_ref[...].astype(compute_dtype),
                         preferred_element_type=jnp.float32) + bk_ref[...]
    v_ref[...] = jnp.dot(x, wv_ref[...].astype(compute_dtype),
                         preferred_element_type=jnp.float32) + bv_ref[...]


def qkv_proj(x, wq, bq, wk, bk, wv, bv, *, block_rows=256,
             compute_dtype=jnp.float32):
    """x: (N, E) -> (q, k, v), each (N, E) f32.  Row-tiled grid, weights are
    fetched once (constant index maps) and stay VMEM-resident."""
    n, e = x.shape
    tm = _row_tile(n, block_rows)
    grid = (n // tm,)
    act_spec = pl.BlockSpec((tm, e), lambda i: (i, 0))
    w_spec = pl.BlockSpec((e, e), lambda i: (0, 0))
    b_spec = pl.BlockSpec((1, e), lambda i: (0, 0))
    out_spec = pl.BlockSpec((tm, e), lambda i: (i, 0))
    wb = wq.dtype.itemsize
    cost = pl.CostEstimate(
        flops=6 * n * e * e,
        transcendentals=0,
        bytes_accessed=(n * e * x.dtype.itemsize + 3 * e * e * wb
                        + 3 * e * 4 + 3 * n * e * 4),
    )
    return pl.pallas_call(
        functools.partial(_qkv_kernel, compute_dtype=compute_dtype),
        grid=grid,
        in_specs=[act_spec, w_spec, b_spec, w_spec, b_spec, w_spec, b_spec],
        out_specs=(out_spec, out_spec, out_spec),
        out_shape=(jax.ShapeDtypeStruct((n, e), jnp.float32),
                   jax.ShapeDtypeStruct((n, e), jnp.float32),
                   jax.ShapeDtypeStruct((n, e), jnp.float32)),
        compiler_params=pltpu.CompilerParams(
            dimension_semantics=("parallel",)),
        cost_estimate=cost,
    )(x, wq, bq.reshape(1, e), wk, bk.reshape(1, e), wv, bv.reshape(1, e))


# ----------------------- kernel 2: flash attention ---------------------------

def _flash_attn_kernel(q_ref, k_ref, v_ref, o_ref, m_sc, l_sc, acc_sc, *,
                       scale, compute_dtype, approx_recip):
    ki = pl.program_id(2)

    @pl.when(ki == 0)
    def _():
        m_sc[...] = jnp.full_like(m_sc, -jnp.inf)
        l_sc[...] = jnp.zeros_like(l_sc)
        acc_sc[...] = jnp.zeros_like(acc_sc)

    # Pre-scale q (smaller than the score tile); MXU operands in compute_dtype,
    # f32 accumulation; softmax statistics kept in f32.
    q = (q_ref[...] * scale).astype(compute_dtype)
    k = k_ref[...].astype(compute_dtype)
    s = jnp.einsum("bqd,bkd->bqk", q, k, preferred_element_type=jnp.float32)

    m_prev = m_sc[...]
    m_new = jnp.maximum(m_prev, jnp.max(s, axis=-1, keepdims=True))
    alpha = jnp.exp(m_prev - m_new)
    p = jnp.exp(s - m_new)
    l_sc[...] = alpha * l_sc[...] + jnp.sum(p, axis=-1, keepdims=True)
    acc_sc[...] = alpha * acc_sc[...] + jnp.einsum(
        "bqk,bkd->bqd", p.astype(compute_dtype),
        v_ref[...].astype(compute_dtype), preferred_element_type=jnp.float32)
    m_sc[...] = m_new

    @pl.when(ki == pl.num_programs(2) - 1)
    def _():
        inv = pl.reciprocal(l_sc[...], approx=approx_recip)
        o_ref[...] = (acc_sc[...] * inv).astype(o_ref.dtype)


def flash_attention(q, k, v, *, block_q=128, block_kv=128,
                    compute_dtype=jnp.float32, approx_recip=False):
    """q, k, v: (B*H, S, D) -> (B*H, S, D).  grid = (B*H, Sq tiles, Skv tiles)
    with the kv axis last ('arbitrary'); online softmax in VMEM scratch."""
    bh, s, d = q.shape
    tq = _row_tile(s, block_q)
    tk = _row_tile(s, block_kv)
    grid = (bh, s // tq, s // tk)
    q_spec = pl.BlockSpec((1, tq, d), lambda b, qi, ki: (b, qi, 0))
    kv_spec = pl.BlockSpec((1, tk, d), lambda b, qi, ki: (b, ki, 0))
    o_spec = pl.BlockSpec((1, tq, d), lambda b, qi, ki: (b, qi, 0))
    n_q = s // tq
    cost = pl.CostEstimate(
        flops=4 * bh * s * s * d,
        transcendentals=bh * s * s,
        bytes_accessed=(bh * s * d * q.dtype.itemsize * (1 + 2 * n_q)
                        + bh * s * d * 4),
    )
    return pl.pallas_call(
        functools.partial(_flash_attn_kernel, scale=1.0 / (d ** 0.5),
                          compute_dtype=compute_dtype,
                          approx_recip=approx_recip),
        grid=grid,
        in_specs=[q_spec, kv_spec, kv_spec],
        out_specs=o_spec,
        out_shape=jax.ShapeDtypeStruct((bh, s, d), jnp.float32),
        scratch_shapes=[pltpu.VMEM((1, tq, 1), jnp.float32),
                        pltpu.VMEM((1, tq, 1), jnp.float32),
                        pltpu.VMEM((1, tq, d), jnp.float32)],
        compiler_params=pltpu.CompilerParams(
            dimension_semantics=("parallel", "parallel", "arbitrary")),
        cost_estimate=cost,
    )(q, k, v)


# ------------- kernel 3: out-proj + LN1 + FFN (d_ff-tiled) + LN2 -------------

def _proj_ln_ffn_ln_kernel(attn_ref, res_ref, wo_ref, bo_ref, g1_ref, be1_ref,
                           w1_ref, b1_ref, w2_ref, b2_ref, g2_ref, be2_ref,
                           o_ref, y_sc, acc_sc, *, eps, compute_dtype):
    j = pl.program_id(1)

    @pl.when(j == 0)
    def _():
        # Output projection + (dropout=identity) + residual + LayerNorm 1.
        proj = jnp.dot(attn_ref[...].astype(compute_dtype),
                       wo_ref[...].astype(compute_dtype),
                       preferred_element_type=jnp.float32) + bo_ref[...]
        y = proj + res_ref[...]
        mu = jnp.mean(y, axis=-1, keepdims=True)
        dy = y - mu
        var = jnp.mean(dy * dy, axis=-1, keepdims=True)   # biased, like torch LN
        y_sc[...] = dy * lax.rsqrt(var + eps) * g1_ref[...] + be1_ref[...]
        acc_sc[...] = jnp.zeros_like(acc_sc)

    # FeedForward, K-tiled over d_ff: Linear -> ReLU -> (dropout=identity)
    # -> accumulate the second Linear's partial sums in f32 scratch.
    h = jnp.maximum(
        jnp.dot(y_sc[...].astype(compute_dtype),
                w1_ref[...].astype(compute_dtype),
                preferred_element_type=jnp.float32) + b1_ref[...], 0.0)
    acc_sc[...] += jnp.dot(h.astype(compute_dtype),
                           w2_ref[...].astype(compute_dtype),
                           preferred_element_type=jnp.float32)

    @pl.when(j == pl.num_programs(1) - 1)
    def _():
        # (dropout=identity) + residual + LayerNorm 2.
        z = acc_sc[...] + b2_ref[...] + y_sc[...]
        mu2 = jnp.mean(z, axis=-1, keepdims=True)
        dz = z - mu2
        var2 = jnp.mean(dz * dz, axis=-1, keepdims=True)
        o_ref[...] = (dz * lax.rsqrt(var2 + eps) * g2_ref[...]
                      + be2_ref[...]).astype(o_ref.dtype)


def proj_ln_ffn_ln(attn, res, wo, bo, g1, be1, w1, b1, w2, b2, g2, be2, *,
                   eps=1e-5, block_rows=256, block_ff=512,
                   compute_dtype=jnp.float32):
    """Fused LN2(FFN(LN1(attn @ wo + bo + res)) + LN1(...)).  (N, E) in/out."""
    n, e = attn.shape
    f = w1.shape[1]
    tm = _row_tile(n, block_rows)
    tf = _col_tile(f, block_ff)
    grid = (n // tm, f // tf)

    act_spec = pl.BlockSpec((tm, e), lambda i, j: (i, 0))
    wo_spec = pl.BlockSpec((e, e), lambda i, j: (0, 0))
    vec_e = pl.BlockSpec((1, e), lambda i, j: (0, 0))
    w1_spec = pl.BlockSpec((e, tf), lambda i, j: (0, j))
    b1_spec = pl.BlockSpec((1, tf), lambda i, j: (0, j))
    w2_spec = pl.BlockSpec((tf, e), lambda i, j: (j, 0))
    out_spec = pl.BlockSpec((tm, e), lambda i, j: (i, 0))

    wb = wo.dtype.itemsize
    cost = pl.CostEstimate(
        flops=2 * n * e * e + 4 * n * e * f,
        transcendentals=2 * n,
        bytes_accessed=(3 * n * e * 4 + (e * e + 2 * e * f) * wb
                        + (6 * e + f) * 4),
    )
    row = lambda t: t.reshape(1, -1)
    return pl.pallas_call(
        functools.partial(_proj_ln_ffn_ln_kernel, eps=eps,
                          compute_dtype=compute_dtype),
        grid=grid,
        in_specs=[act_spec, act_spec, wo_spec, vec_e, vec_e, vec_e,
                  w1_spec, b1_spec, w2_spec, vec_e, vec_e, vec_e],
        out_specs=out_spec,
        out_shape=jax.ShapeDtypeStruct((n, e), jnp.float32),
        scratch_shapes=[pltpu.VMEM((tm, e), jnp.float32),
                        pltpu.VMEM((tm, e), jnp.float32)],
        compiler_params=pltpu.CompilerParams(
            dimension_semantics=("parallel", "arbitrary")),
        cost_estimate=cost,
    )(attn, res, wo, row(bo), row(g1), row(be1),
      w1, row(b1), w2, row(b2), row(g2), row(be2))


# ------------------------- Encoder forward (glue) ----------------------------

def encoder_block_forward(x, p, n_heads, *, compute_dtype, block_rows,
                          block_q, block_kv, block_ff, approx_recip):
    B, S, E = x.shape
    D = E // n_heads
    xf = x.reshape(B * S, E)

    q, k, v = qkv_proj(xf, p["wq"], p["bq"], p["wk"], p["bk"], p["wv"], p["bv"],
                       block_rows=block_rows, compute_dtype=compute_dtype)

    # torch's raw `.view(B, H, S, D)` is a row-major relabel of the flat
    # buffer: exactly reshape(B*S, E) -> (B*H, S, D).  Pure metadata reshape.
    def split(t):
        return t.reshape(B * n_heads, S, D)

    attn = flash_attention(split(q), split(k), split(v),
                           block_q=block_q, block_kv=block_kv,
                           compute_dtype=compute_dtype,
                           approx_recip=approx_recip)
    attn = attn.reshape(B * S, E)   # inverse relabel (torch's .view(B, S, E))

    out = proj_ln_ffn_ln(attn, xf,
                         p["wo"], p["bo"], p["ln1_g"], p["ln1_b"],
                         p["w1"], p["b1"], p["w2"], p["b2"],
                         p["ln2_g"], p["ln2_b"],
                         block_rows=block_rows, block_ff=block_ff,
                         compute_dtype=compute_dtype)
    return out.reshape(B, S, E)


def encoder_forward(x, params, n_heads, mask=None, *,
                    compute_dtype=jnp.float32, block_rows=256,
                    block_q=128, block_kv=128, block_ff=512,
                    approx_recip=False):
    assert mask is None  # TODO(synk): masked_fill(-inf) mask path not implemented.
    for p in params:
        x = encoder_block_forward(x, p, n_heads, compute_dtype=compute_dtype,
                                  block_rows=block_rows, block_q=block_q,
                                  block_kv=block_kv, block_ff=block_ff,
                                  approx_recip=approx_recip)
    return x


# --------------------------- Parameter creation ------------------------------

def _init_linear(key, din, dout):
    kw, kb = jax.random.split(key)
    bound = 1.0 / (din ** 0.5)
    w = jax.random.uniform(kw, (din, dout), jnp.float32, -bound, bound)
    b = jax.random.uniform(kb, (dout,), jnp.float32, -bound, bound)
    return w, b


def init_encoder_params(key, n_blocks, embed_size, d_ff):
    params = []
    for _ in range(n_blocks):
        keys = jax.random.split(key, 7)
        key = keys[0]
        wq, bq = _init_linear(keys[1], embed_size, embed_size)
        wk, bk = _init_linear(keys[2], embed_size, embed_size)
        wv, bv = _init_linear(keys[3], embed_size, embed_size)
        wo, bo = _init_linear(keys[4], embed_size, embed_size)
        w1, b1 = _init_linear(keys[5], embed_size, d_ff)
        w2, b2 = _init_linear(keys[6], d_ff, embed_size)
        params.append(dict(
            wq=wq, bq=bq, wk=wk, bk=bk, wv=wv, bv=bv, wo=wo, bo=bo,
            w1=w1, b1=b1, w2=w2, b2=b2,
            ln1_g=jnp.ones((embed_size,), jnp.float32),
            ln1_b=jnp.zeros((embed_size,), jnp.float32),
            ln2_g=jnp.ones((embed_size,), jnp.float32),
            ln2_b=jnp.zeros((embed_size,), jnp.float32),
        ))
    return params


def cast_matmul_weights(params, dtype):
    """Stream matmul weights as bf16 (halves weight DMA bytes); biases/LN stay f32."""
    out = []
    for p in params:
        q = dict(p)
        for name in ("wq", "wk", "wv", "wo", "w1", "w2"):
            q[name] = p[name].astype(dtype)
        out.append(q)
    return out


# ---------------------------- Pure-JAX reference -----------------------------

def _ref_ln(y, g, b, eps=1e-5):
    mu = jnp.mean(y, axis=-1, keepdims=True)
    d = y - mu
    var = jnp.mean(d * d, axis=-1, keepdims=True)
    return d / jnp.sqrt(var + eps) * g + b


def ref_encoder(x, params, n_heads):
    B, S, E = x.shape
    D = E // n_heads
    for p in params:
        xf = x.reshape(B * S, E)
        q = (xf @ p["wq"] + p["bq"]).reshape(B, n_heads, S, D)   # raw .view relabel
        k = (xf @ p["wk"] + p["bk"]).reshape(B, n_heads, S, D)
        v = (xf @ p["wv"] + p["bv"]).reshape(B, n_heads, S, D)
        s = jnp.einsum("bhqd,bhkd->bhqk", q, k) / (D ** 0.5)
        a = jax.nn.softmax(s, axis=-1)
        o = jnp.einsum("bhqk,bhkd->bhqd", a, v).reshape(B * S, E)
        proj = o @ p["wo"] + p["bo"]
        y = _ref_ln(proj + xf, p["ln1_g"], p["ln1_b"])
        h = jnp.maximum(y @ p["w1"] + p["b1"], 0.0) @ p["w2"] + p["b2"]
        x = _ref_ln(h + y, p["ln2_g"], p["ln2_b"]).reshape(B, S, E)
    return x


# --------------------------------- Main ---------------------------------------

if __name__ == "__main__":
    n_blocks, n_heads, embed_size, d_ff = 2, 4, 32, 64
    batch, seq = 2, 8

    root = jax.random.PRNGKey(0)
    kx, kp = jax.random.split(root)
    x = jax.random.normal(kx, (batch, seq, embed_size), jnp.float32)
    params = init_encoder_params(kp, n_blocks, embed_size, d_ff)

    # block_rows=8 forces multi-step row grids even at this toy size so the
    # pipelined path is actually exercised; at production use 256-512 rows,
    # 128-256 q/kv tiles and block_ff 512-1024.
    fwd_f32 = jax.jit(functools.partial(
        encoder_forward, n_heads=n_heads, compute_dtype=jnp.float32,
        block_rows=8, block_q=128, block_kv=128, block_ff=512,
        approx_recip=False))
    out = jax.block_until_ready(fwd_f32(x, params))

    ref = jax.block_until_ready(ref_encoder(x, params, n_heads))
    assert out.shape == (batch, seq, embed_size)
    assert jnp.allclose(out, ref, atol=1e-4, rtol=1e-4)

    # bf16 MXU-operand mode (f32 accumulation, f32 LN/softmax, approx
    # reciprocal on the EUP).  Tolerance re-baselined for bf16 operand
    # rounding, per review.
    params_bf16 = cast_matmul_weights(params, jnp.bfloat16)
    fwd_bf16 = jax.jit(functools.partial(
        encoder_forward, n_heads=n_heads, compute_dtype=jnp.bfloat16,
        block_rows=8, block_q=128, block_kv=128, block_ff=512,
        approx_recip=True))
    out_bf16 = jax.block_until_ready(fwd_bf16(x, params_bf16))
    assert out_bf16.shape == (batch, seq, embed_size)
    assert jnp.allclose(out_bf16, ref, atol=1e-1, rtol=1e-1)

    print("KERNEL_OK")
</pallas_src>

<mosaic_0001>
module attributes {stable_mosaic.version = 11 : i64} {
  func.func @_qkv_kernel(%arg0: i32, %arg1: memref<8x32xf32, #tpu.memory_space<vmem>>, %arg2: memref<32x32xf32, #tpu.memory_space<vmem>>, %arg3: memref<1x32xf32, #tpu.memory_space<vmem>>, %arg4: memref<32x32xf32, #tpu.memory_space<vmem>>, %arg5: memref<1x32xf32, #tpu.memory_space<vmem>>, %arg6: memref<32x32xf32, #tpu.memory_space<vmem>>, %arg7: memref<1x32xf32, #tpu.memory_space<vmem>>, %arg8: memref<8x32xf32, #tpu.memory_space<vmem>>, %arg9: memref<8x32xf32, #tpu.memory_space<vmem>>, %arg10: memref<8x32xf32, #tpu.memory_space<vmem>>) attributes {dimension_semantics = [#tpu.dimension_semantics<parallel>], iteration_bounds = array<i64: 2>, scalar_prefetch = 0 : i64, scratch_operands = 0 : i64, tpu.core_type = #tpu.core_type<tc>, window_params = [{transform_indices = @transform_0, window_bounds = array<i64: 8, 32>}, {pipeline_mode = #tpu.pipeline_mode<synchronous>, transform_indices = @transform_1, window_bounds = array<i64: 32, 32>}, {pipeline_mode = #tpu.pipeline_mode<synchronous>, transform_indices = @transform_2, window_bounds = array<i64: 1, 32>}, {pipeline_mode = #tpu.pipeline_mode<synchronous>, transform_indices = @transform_3, window_bounds = array<i64: 32, 32>}, {pipeline_mode = #tpu.pipeline_mode<synchronous>, transform_indices = @transform_4, window_bounds = array<i64: 1, 32>}, {pipeline_mode = #tpu.pipeline_mode<synchronous>, transform_indices = @transform_5, window_bounds = array<i64: 32, 32>}, {pipeline_mode = #tpu.pipeline_mode<synchronous>, transform_indices = @transform_6, window_bounds = array<i64: 1, 32>}, {transform_indices = @transform_7, window_bounds = array<i64: 8, 32>}, {transform_indices = @transform_8, window_bounds = array<i64: 8, 32>}, {transform_indices = @transform_9, window_bounds = array<i64: 8, 32>}]} {
    %c0 = arith.constant 0 : index
    %c0_0 = arith.constant 0 : index
    %0 = vector.load %arg1[%c0, %c0_0] : memref<8x32xf32, #tpu.memory_space<vmem>>, vector<8x32xf32>
    %c0_1 = arith.constant 0 : index
    %c0_2 = arith.constant 0 : index
    %1 = vector.load %arg2[%c0_1, %c0_2] : memref<32x32xf32, #tpu.memory_space<vmem>>, vector<32x32xf32>
    %cst = arith.constant dense<0.000000e+00> : vector<8x32xf32>
    %2 = tpu.matmul %0, %1, %cst {dimension_numbers = #tpu.dot_dimension_numbers<[1], [0], [0], [1], [0, 0, 1, 1], [], []>} : vector<8x32xf32>, vector<32x32xf32>, vector<8x32xf32> -> vector<8x32xf32>
    %c0_3 = arith.constant 0 : index
    %c0_4 = arith.constant 0 : index
    %3 = vector.load %arg3[%c0_3, %c0_4] : memref<1x32xf32, #tpu.memory_space<vmem>>, vector<1x32xf32>
    %4 = vector.broadcast %3 : vector<1x32xf32> to vector<8x32xf32>
    %5 = arith.addf %2, %4 : vector<8x32xf32>
    %c0_5 = arith.constant 0 : index
    %c0_6 = arith.constant 0 : index
    %6 = vector.load %arg8[%c0_5, %c0_6] : memref<8x32xf32, #tpu.memory_space<vmem>>, vector<8x32xf32>
    tpu.vector_store %arg8[%c0_5, %c0_6], %5 {strides = array<i32>} : memref<8x32xf32, #tpu.memory_space<vmem>>, vector<8x32xf32>,
    %c0_7 = arith.constant 0 : index
    %c0_8 = arith.constant 0 : index
    %7 = vector.load %arg4[%c0_7, %c0_8] : memref<32x32xf32, #tpu.memory_space<vmem>>, vector<32x32xf32>
    %cst_9 = arith.constant dense<0.000000e+00> : vector<8x32xf32>
    %8 = tpu.matmul %0, %7, %cst_9 {dimension_numbers = #tpu.dot_dimension_numbers<[1], [0], [0], [1], [0, 0, 1, 1], [], []>} : vector<8x32xf32>, vector<32x32xf32>, vector<8x32xf32> -> vector<8x32xf32>
    %c0_10 = arith.constant 0 : index
    %c0_11 = arith.constant 0 : index
    %9 = vector.load %arg5[%c0_10, %c0_11] : memref<1x32xf32, #tpu.memory_space<vmem>>, vector<1x32xf32>
    %10 = vector.broadcast %9 : vector<1x32xf32> to vector<8x32xf32>
    %11 = arith.addf %8, %10 : vector<8x32xf32>
    %c0_12 = arith.constant 0 : index
    %c0_13 = arith.constant 0 : index
    %12 = vector.load %arg9[%c0_12, %c0_13] : memref<8x32xf32, #tpu.memory_space<vmem>>, vector<8x32xf32>
    tpu.vector_store %arg9[%c0_12, %c0_13], %11 {strides = array<i32>} : memref<8x32xf32, #tpu.memory_space<vmem>>, vector<8x32xf32>,
    %c0_14 = arith.constant 0 : index
    %c0_15 = arith.constant 0 : index
    %13 = vector.load %arg6[%c0_14, %c0_15] : memref<32x32xf32, #tpu.memory_space<vmem>>, vector<32x32xf32>
    %cst_16 = arith.constant dense<0.000000e+00> : vector<8x32xf32>
    %14 = tpu.matmul %0, %13, %cst_16 {dimension_numbers = #tpu.dot_dimension_numbers<[1], [0], [0], [1], [0, 0, 1, 1], [], []>} : vector<8x32xf32>, vector<32x32xf32>, vector<8x32xf32> -> vector<8x32xf32>
    %c0_17 = arith.constant 0 : index
    %c0_18 = arith.constant 0 : index
    %15 = vector.load %arg7[%c0_17, %c0_18] : memref<1x32xf32, #tpu.memory_space<vmem>>, vector<1x32xf32>
    %16 = vector.broadcast %15 : vector<1x32xf32> to vector<8x32xf32>
    %17 = arith.addf %14, %16 : vector<8x32xf32>
    %c0_19 = arith.constant 0 : index
    %c0_20 = arith.constant 0 : index
    %18 = vector.load %arg10[%c0_19, %c0_20] : memref<8x32xf32, #tpu.memory_space<vmem>>, vector<8x32xf32>
    tpu.vector_store %arg10[%c0_19, %c0_20], %17 {strides = array<i32>} : memref<8x32xf32, #tpu.memory_space<vmem>>, vector<8x32xf32>,
    return
  }
  func.func @transform_0(%arg0: i32) -> (i32, i32) {
    %c0_i32 = arith.constant 0 : i32
    %c0_i32_0 = arith.constant 0 : i32
    return %arg0, %c0_i32 : i32, i32
  }
  func.func @transform_1(%arg0: i32) -> (i32, i32) {
    %c0_i32 = arith.constant 0 : i32
    %c0_i32_0 = arith.constant 0 : i32
    %c0_i32_1 = arith.constant 0 : i32
    return %c0_i32, %c0_i32_0 : i32, i32
  }
  func.func @transform_2(%arg0: i32) -> (i32, i32) {
    %c0_i32 = arith.constant 0 : i32
    %c0_i32_0 = arith.constant 0 : i32
    %c0_i32_1 = arith.constant 0 : i32
    return %c0_i32, %c0_i32_0 : i32, i32
  }
  func.func @transform_3(%arg0: i32) -> (i32, i32) {
    %c0_i32 = arith.constant 0 : i32
    %c0_i32_0 = arith.constant 0 : i32
    %c0_i32_1 = arith.constant 0 : i32
    return %c0_i32, %c0_i32_0 : i32, i32
  }
  func.func @transform_4(%arg0: i32) -> (i32, i32) {
    %c0_i32 = arith.constant 0 : i32
    %c0_i32_0 = arith.constant 0 : i32
    %c0_i32_1 = arith.constant 0 : i32
    return %c0_i32, %c0_i32_0 : i32, i32
  }
  func.func @transform_5(%arg0: i32) -> (i32, i32) {
    %c0_i32 = arith.constant 0 : i32
    %c0_i32_0 = arith.constant 0 : i32
    %c0_i32_1 = arith.constant 0 : i32
    return %c0_i32, %c0_i32_0 : i32, i32
  }
  func.func @transform_6(%arg0: i32) -> (i32, i32) {
    %c0_i32 = arith.constant 0 : i32
    %c0_i32_0 = arith.constant 0 : i32
    %c0_i32_1 = arith.constant 0 : i32
    return %c0_i32, %c0_i32_0 : i32, i32
  }
  func.func @transform_7(%arg0: i32) -> (i32, i32) {
    %c0_i32 = arith.constant 0 : i32
    %c0_i32_0 = arith.constant 0 : i32
    return %arg0, %c0_i32 : i32, i32
  }
  func.func @transform_8(%arg0: i32) -> (i32, i32) {
    %c0_i32 = arith.constant 0 : i32
    %c0_i32_0 = arith.constant 0 : i32
    return %arg0, %c0_i32 : i32, i32
  }
  func.func @transform_9(%arg0: i32) -> (i32, i32) {
    %c0_i32 = arith.constant 0 : i32
    %c0_i32_0 = arith.constant 0 : i32
    return %arg0, %c0_i32 : i32, i32
  }
}

module attributes {stable_mosaic.version = 11 : i64} {
  func.func @_flash_attn_kernel(%arg0: i32, %arg1: i32, %arg2: i32, %arg3: memref<1x8x8xf32, #tpu.memory_space<vmem>>, %arg4: memref<1x8x8xf32, #tpu.memory_space<vmem>>, %arg5: memref<1x8x8xf32, #tpu.memory_space<vmem>>, %arg6: memref<1x8x8xf32, #tpu.memory_space<vmem>>, %arg7: memref<1x8x1xf32, #tpu.memory_space<vmem>>, %arg8: memref<1x8x1xf32, #tpu.memory_space<vmem>>, %arg9: memref<1x8x8xf32, #tpu.memory_space<vmem>>) attributes {dimension_semantics = [#tpu.dimension_semantics<parallel>, #tpu.dimension_semantics<parallel>, #tpu.dimension_semantics<arbitrary>], iteration_bounds = array<i64: 8, 1, 1>, scalar_prefetch = 0 : i64, scratch_operands = 3 : i64, tpu.core_type = #tpu.core_type<tc>, window_params = [{transform_indices = @transform_0, window_bounds = array<i64: 1, 8, 8>}, {transform_indices = @transform_1, window_bounds = array<i64: 1, 8, 8>}, {transform_indices = @transform_2, window_bounds = array<i64: 1, 8, 8>}, {transform_indices = @transform_3, window_bounds = array<i64: 1, 8, 8>}]} {
    %c0_i32 = arith.constant 0 : i32
    %0 = arith.cmpi eq, %arg2, %c0_i32 : i32
    %1 = arith.extui %0 : i1 to i32
    %c0_i32_0 = arith.constant 0 : i32
    %2 = arith.cmpi ne, %1, %c0_i32_0 : i32
    scf.if %2 {
      %cst_33 = arith.constant 0xFF800000 : f32
      %34 = vector.broadcast %cst_33 : f32 to vector<1x8x1xf32>
      %c0_34 = arith.constant 0 : index
      %c0_35 = arith.constant 0 : index
      %c0_36 = arith.constant 0 : index
      %35 = vector.load %arg7[%c0_34, %c0_35, %c0_36] : memref<1x8x1xf32, #tpu.memory_space<vmem>>, vector<1x8x1xf32>
      tpu.vector_store %arg7[%c0_34, %c0_35, %c0_36], %34 {strides = array<i32>} : memref<1x8x1xf32, #tpu.memory_space<vmem>>, vector<1x8x1xf32>,
      %cst_37 = arith.constant 0.000000e+00 : f32
      %36 = vector.broadcast %cst_37 : f32 to vector<1x8x1xf32>
      %c0_38 = arith.constant 0 : index
      %c0_39 = arith.constant 0 : index
      %c0_40 = arith.constant 0 : index
      %37 = vector.load %arg8[%c0_38, %c0_39, %c0_40] : memref<1x8x1xf32, #tpu.memory_space<vmem>>, vector<1x8x1xf32>
      tpu.vector_store %arg8[%c0_38, %c0_39, %c0_40], %36 {strides = array<i32>} : memref<1x8x1xf32, #tpu.memory_space<vmem>>, vector<1x8x1xf32>,
      %cst_41 = arith.constant 0.000000e+00 : f32
      %38 = vector.broadcast %cst_41 : f32 to vector<1x8x8xf32>
      %c0_42 = arith.constant 0 : index
      %c0_43 = arith.constant 0 : index
      %c0_44 = arith.constant 0 : index
      %39 = vector.load %arg9[%c0_42, %c0_43, %c0_44] : memref<1x8x8xf32, #tpu.memory_space<vmem>>, vector<1x8x8xf32>
      tpu.vector_store %arg9[%c0_42, %c0_43, %c0_44], %38 {strides = array<i32>} : memref<1x8x8xf32, #tpu.memory_space<vmem>>, vector<1x8x8xf32>,
    } else {
    }
    %c0 = arith.constant 0 : index
    %c0_1 = arith.constant 0 : index
    %c0_2 = arith.constant 0 : index
    %3 = vector.load %arg3[%c0, %c0_1, %c0_2] : memref<1x8x8xf32, #tpu.memory_space<vmem>>, vector<1x8x8xf32>
    %cst = arith.constant 0.353553385 : f32
    %4 = vector.broadcast %cst : f32 to vector<1x8x8xf32>
    %5 = arith.mulf %3, %4 : vector<1x8x8xf32>
    %c0_3 = arith.constant 0 : index
    %c0_4 = arith.constant 0 : index
    %c0_5 = arith.constant 0 : index
    %6 = vector.load %arg4[%c0_3, %c0_4, %c0_5] : memref<1x8x8xf32, #tpu.memory_space<vmem>>, vector<1x8x8xf32>
    "tpu.trace_start"() <{level = 10 : i32, message = "bqd,bkd->bqk"}> : () -> ()
    %cst_6 = arith.constant dense<0.000000e+00> : vector<1x8x8xf32>
    %7 = tpu.matmul %5, %6, %cst_6 {dimension_numbers = #tpu.dot_dimension_numbers<[2], [2], [1], [1], [0, 0, 0, 1, 1, 1], [0], [0]>} : vector<1x8x8xf32>, vector<1x8x8xf32>, vector<1x8x8xf32> -> vector<1x8x8xf32>
    "tpu.trace_stop"() : () -> ()
    %c0_7 = arith.constant 0 : index
    %c0_8 = arith.constant 0 : index
    %c0_9 = arith.constant 0 : index
    %8 = vector.load %arg7[%c0_7, %c0_8, %c0_9] : memref<1x8x1xf32, #tpu.memory_space<vmem>>, vector<1x8x1xf32>
    %cst_10 = arith.constant dense<0xFF800000> : vector<1x8xf32>
    %9 = vector.multi_reduction <maximumf>, %7, %cst_10 [2] : vector<1x8x8xf32> to vector<1x8xf32>
    %10 = vector.shape_cast %9 : vector<1x8xf32> to vector<1x8x1xf32>
    %11 = arith.maximumf %8, %10 : vector<1x8x1xf32>
    %12 = arith.subf %8, %11 : vector<1x8x1xf32>
    %13 = math.exp %12 : vector<1x8x1xf32>
    %14 = vector.broadcast %11 : vector<1x8x1xf32> to vector<1x8x8xf32>
    %15 = arith.subf %7, %14 : vector<1x8x8xf32>
    %16 = math.exp %15 : vector<1x8x8xf32>
    %c0_11 = arith.constant 0 : index
    %c0_12 = arith.constant 0 : index
    %c0_13 = arith.constant 0 : index
    %17 = vector.load %arg8[%c0_11, %c0_12, %c0_13] : memref<1x8x1xf32, #tpu.memory_space<vmem>>, vector<1x8x1xf32>
    %18 = arith.mulf %13, %17 : vector<1x8x1xf32>
    %cst_14 = arith.constant dense<0.000000e+00> : vector<1x8xf32>
    %19 = vector.multi_reduction <add>, %16, %cst_14 [2] : vector<1x8x8xf32> to vector<1x8xf32>
    %20 = vector.shape_cast %19 : vector<1x8xf32> to vector<1x8x1xf32>
    %21 = arith.addf %18, %20 : vector<1x8x1xf32>
    %c0_15 = arith.constant 0 : index
    %c0_16 = arith.constant 0 : index
    %c0_17 = arith.constant 0 : index
    %22 = vector.load %arg8[%c0_15, %c0_16, %c0_17] : memref<1x8x1xf32, #tpu.memory_space<vmem>>, vector<1x8x1xf32>
    tpu.vector_store %arg8[%c0_15, %c0_16, %c0_17], %21 {strides = array<i32>} : memref<1x8x1xf32, #tpu.memory_space<vmem>>, vector<1x8x1xf32>,
    %c0_18 = arith.constant 0 : index
    %c0_19 = arith.constant 0 : index
    %c0_20 = arith.constant 0 : index
    %23 = vector.load %arg9[%c0_18, %c0_19, %c0_20] : memref<1x8x8xf32, #tpu.memory_space<vmem>>, vector<1x8x8xf32>
    %24 = vector.broadcast %13 : vector<1x8x1xf32> to vector<1x8x8xf32>
    %25 = arith.mulf %24, %23 : vector<1x8x8xf32>
    %c0_21 = arith.constant 0 : index
    %c0_22 = arith.constant 0 : index
    %c0_23 = arith.constant 0 : index
    %26 = vector.load %arg5[%c0_21, %c0_22, %c0_23] : memref<1x8x8xf32, #tpu.memory_space<vmem>>, vector<1x8x8xf32>
    "tpu.trace_start"() <{level = 10 : i32, message = "bqk,bkd->bqd"}> : () -> ()
    %cst_24 = arith.constant dense<0.000000e+00> : vector<1x8x8xf32>
    %27 = tpu.matmul %16, %26, %cst_24 {dimension_numbers = #tpu.dot_dimension_numbers<[2], [1], [1], [2], [0, 0, 0, 1, 1, 2], [0], [0]>} : vector<1x8x8xf32>, vector<1x8x8xf32>, vector<1x8x8xf32> -> vector<1x8x8xf32>
    "tpu.trace_stop"() : () -> ()
    %28 = arith.addf %25, %27 : vector<1x8x8xf32>
    %c0_25 = arith.constant 0 : index
    %c0_26 = arith.constant 0 : index
    %c0_27 = arith.constant 0 : index
    %29 = vector.load %arg9[%c0_25, %c0_26, %c0_27] : memref<1x8x8xf32, #tpu.memory_space<vmem>>, vector<1x8x8xf32>
    tpu.vector_store %arg9[%c0_25, %c0_26, %c0_27], %28 {strides = array<i32>} : memref<1x8x8xf32, #tpu.memory_space<vmem>>, vector<1x8x8xf32>,
    %c0_28 = arith.constant 0 : index
    %c0_29 = arith.constant 0 : index
    %c0_30 = arith.constant 0 : index
    %30 = vector.load %arg7[%c0_28, %c0_29, %c0_30] : memref<1x8x1xf32, #tpu.memory_space<vmem>>, vector<1x8x1xf32>
    tpu.vector_store %arg7[%c0_28, %c0_29, %c0_30], %11 {strides = array<i32>} : memref<1x8x1xf32, #tpu.memory_space<vmem>>, vector<1x8x1xf32>,
    %c0_i32_31 = arith.constant 0 : i32
    %31 = arith.cmpi eq, %arg2, %c0_i32_31 : i32
    %32 = arith.extui %31 : i1 to i32
    %c0_i32_32 = arith.constant 0 : i32
    %33 = arith.cmpi ne, %32, %c0_i32_32 : i32
    scf.if %33 {
      %c0_33 = arith.constant 0 : index
      %c0_34 = arith.constant 0 : index
      %c0_35 = arith.constant 0 : index
      %34 = vector.load %arg8[%c0_33, %c0_34, %c0_35] : memref<1x8x1xf32, #tpu.memory_space<vmem>>, vector<1x8x1xf32>
      %35 = tpu.reciprocal %34 : vector<1x8x1xf32> -> vector<1x8x1xf32>
      %c0_36 = arith.constant 0 : index
      %c0_37 = arith.constant 0 : index
      %c0_38 = arith.constant 0 : index
      %36 = vector.load %arg9[%c0_36, %c0_37, %c0_38] : memref<1x8x8xf32, #tpu.memory_space<vmem>>, vector<1x8x8xf32>
      %37 = vector.broadcast %35 : vector<1x8x1xf32> to vector<1x8x8xf32>
      %38 = arith.mulf %36, %37 : vector<1x8x8xf32>
      %c0_39 = arith.constant 0 : index
      %c0_40 = arith.constant 0 : index
      %c0_41 = arith.constant 0 : index
      %39 = vector.load %arg6[%c0_39, %c0_40, %c0_41] : memref<1x8x8xf32, #tpu.memory_space<vmem>>, vector<1x8x8xf32>
      tpu.vector_store %arg6[%c0_39, %c0_40, %c0_41], %38 {strides = array<i32>} : memref<1x8x8xf32, #tpu.memory_space<vmem>>, vector<1x8x8xf32>,
    } else {
    }
    return
  }
  func.func @transform_0(%arg0: i32, %arg1: i32, %arg2: i32) -> (i32, i32, i32) {
    %c0_i32 = arith.constant 0 : i32
    %c0_i32_0 = arith.constant 0 : i32
    return %arg0, %arg1, %c0_i32 : i32, i32, i32
  }
  func.func @transform_1(%arg0: i32, %arg1: i32, %arg2: i32) -> (i32, i32, i32) {
    %c0_i32 = arith.constant 0 : i32
    %c0_i32_0 = arith.constant 0 : i32
    return %arg0, %arg2, %c0_i32 : i32, i32, i32
  }
  func.func @transform_2(%arg0: i32, %arg1: i32, %arg2: i32) -> (i32, i32, i32) {
    %c0_i32 = arith.constant 0 : i32
    %c0_i32_0 = arith.constant 0 : i32
    return %arg0, %arg2, %c0_i32 : i32, i32, i32
  }
  func.func @transform_3(%arg0: i32, %arg1: i32, %arg2: i32) -> (i32, i32, i32) {
    %c0_i32 = arith.constant 0 : i32
    %c0_i32_0 = arith.constant 0 : i32
    return %arg0, %arg1, %c0_i32 : i32, i32, i32
  }
}

module attributes {stable_mosaic.version = 11 : i64} {
  func.func @_proj_ln_ffn_ln_kernel(%arg0: i32, %arg1: i32, %arg2: memref<8x32xf32, #tpu.memory_space<vmem>>, %arg3: memref<8x32xf32, #tpu.memory_space<vmem>>, %arg4: memref<32x32xf32, #tpu.memory_space<vmem>>, %arg5: memref<1x32xf32, #tpu.memory_space<vmem>>, %arg6: memref<1x32xf32, #tpu.memory_space<vmem>>, %arg7: memref<1x32xf32, #tpu.memory_space<vmem>>, %arg8: memref<32x64xf32, #tpu.memory_space<vmem>>, %arg9: memref<1x64xf32, #tpu.memory_space<vmem>>, %arg10: memref<64x32xf32, #tpu.memory_space<vmem>>, %arg11: memref<1x32xf32, #tpu.memory_space<vmem>>, %arg12: memref<1x32xf32, #tpu.memory_space<vmem>>, %arg13: memref<1x32xf32, #tpu.memory_space<vmem>>, %arg14: memref<8x32xf32, #tpu.memory_space<vmem>>, %arg15: memref<8x32xf32, #tpu.memory_space<vmem>>, %arg16: memref<8x32xf32, #tpu.memory_space<vmem>>) attributes {dimension_semantics = [#tpu.dimension_semantics<parallel>, #tpu.dimension_semantics<arbitrary>], iteration_bounds = array<i64: 2, 1>, scalar_prefetch = 0 : i64, scratch_operands = 2 : i64, tpu.core_type = #tpu.core_type<tc>, window_params = [{transform_indices = @transform_0, window_bounds = array<i64: 8, 32>}, {transform_indices = @transform_1, window_bounds = array<i64: 8, 32>}, {pipeline_mode = #tpu.pipeline_mode<synchronous>, transform_indices = @transform_2, window_bounds = array<i64: 32, 32>}, {pipeline_mode = #tpu.pipeline_mode<synchronous>, transform_indices = @transform_3, window_bounds = array<i64: 1, 32>}, {pipeline_mode = #tpu.pipeline_mode<synchronous>, transform_indices = @transform_4, window_bounds = array<i64: 1, 32>}, {pipeline_mode = #tpu.pipeline_mode<synchronous>, transform_indices = @transform_5, window_bounds = array<i64: 1, 32>}, {transform_indices = @transform_6, window_bounds = array<i64: 32, 64>}, {transform_indices = @transform_7, window_bounds = array<i64: 1, 64>}, {transform_indices = @transform_8, window_bounds = array<i64: 64, 32>}, {pipeline_mode = #tpu.pipeline_mode<synchronous>, transform_indices = @transform_9, window_bounds = array<i64: 1, 32>}, {pipeline_mode = #tpu.pipeline_mode<synchronous>, transform_indices = @transform_10, window_bounds = array<i64: 1, 32>}, {pipeline_mode = #tpu.pipeline_mode<synchronous>, transform_indices = @transform_11, window_bounds = array<i64: 1, 32>}, {transform_indices = @transform_12, window_bounds = array<i64: 8, 32>}]} {
    %c0_i32 = arith.constant 0 : i32
    %0 = arith.cmpi eq, %arg1, %c0_i32 : i32
    %1 = arith.extui %0 : i1 to i32
    %c0_i32_0 = arith.constant 0 : i32
    %2 = arith.cmpi ne, %1, %c0_i32_0 : i32
    scf.if %2 {
      %c0_16 = arith.constant 0 : index
      %c0_17 = arith.constant 0 : index
      %19 = vector.load %arg2[%c0_16, %c0_17] : memref<8x32xf32, #tpu.memory_space<vmem>>, vector<8x32xf32>
      %c0_18 = arith.constant 0 : index
      %c0_19 = arith.constant 0 : index
      %20 = vector.load %arg4[%c0_18, %c0_19] : memref<32x32xf32, #tpu.memory_space<vmem>>, vector<32x32xf32>
      %cst_20 = arith.constant dense<0.000000e+00> : vector<8x32xf32>
      %21 = tpu.matmul %19, %20, %cst_20 {dimension_numbers = #tpu.dot_dimension_numbers<[1], [0], [0], [1], [0, 0, 1, 1], [], []>} : vector<8x32xf32>, vector<32x32xf32>, vector<8x32xf32> -> vector<8x32xf32>
      %c0_21 = arith.constant 0 : index
      %c0_22 = arith.constant 0 : index
      %22 = vector.load %arg5[%c0_21, %c0_22] : memref<1x32xf32, #tpu.memory_space<vmem>>, vector<1x32xf32>
      %23 = vector.broadcast %22 : vector<1x32xf32> to vector<8x32xf32>
      %24 = arith.addf %21, %23 : vector<8x32xf32>
      %c0_23 = arith.constant 0 : index
      %c0_24 = arith.constant 0 : index
      %25 = vector.load %arg3[%c0_23, %c0_24] : memref<8x32xf32, #tpu.memory_space<vmem>>, vector<8x32xf32>
      %26 = arith.addf %24, %25 : vector<8x32xf32>
      %cst_25 = arith.constant dense<0.000000e+00> : vector<8xf32>
      %27 = vector.multi_reduction <add>, %26, %cst_25 [1] : vector<8x32xf32> to vector<8xf32>
      %28 = vector.shape_cast %27 : vector<8xf32> to vector<8x1xf32>
      %cst_26 = arith.constant 3.200000e+01 : f32
      %29 = vector.broadcast %cst_26 : f32 to vector<8x1xf32>
      %30 = arith.divf %28, %29 : vector<8x1xf32>
      %31 = vector.broadcast %30 : vector<8x1xf32> to vector<8x32xf32>
      %32 = arith.subf %26, %31 : vector<8x32xf32>
      %33 = arith.mulf %32, %32 : vector<8x32xf32>
      %cst_27 = arith.constant dense<0.000000e+00> : vector<8xf32>
      %34 = vector.multi_reduction <add>, %33, %cst_27 [1] : vector<8x32xf32> to vector<8xf32>
      %35 = vector.shape_cast %34 : vector<8xf32> to vector<8x1xf32>
      %cst_28 = arith.constant 3.200000e+01 : f32
      %36 = vector.broadcast %cst_28 : f32 to vector<8x1xf32>
      %37 = arith.divf %35, %36 : vector<8x1xf32>
      %cst_29 = arith.constant 9.99999974E-6 : f32
      %38 = vector.broadcast %cst_29 : f32 to vector<8x1xf32>
      %39 = arith.addf %37, %38 : vector<8x1xf32>
      %40 = math.rsqrt %39 : vector<8x1xf32>
      %41 = vector.broadcast %40 : vector<8x1xf32> to vector<8x32xf32>
      %42 = arith.mulf %32, %41 : vector<8x32xf32>
      %c0_30 = arith.constant 0 : index
      %c0_31 = arith.constant 0 : index
      %43 = vector.load %arg6[%c0_30, %c0_31] : memref<1x32xf32, #tpu.memory_space<vmem>>, vector<1x32xf32>
      %44 = vector.broadcast %43 : vector<1x32xf32> to vector<8x32xf32>
      %45 = arith.mulf %42, %44 : vector<8x32xf32>
      %c0_32 = arith.constant 0 : index
      %c0_33 = arith.constant 0 : index
      %46 = vector.load %arg7[%c0_32, %c0_33] : memref<1x32xf32, #tpu.memory_space<vmem>>, vector<1x32xf32>
      %47 = vector.broadcast %46 : vector<1x32xf32> to vector<8x32xf32>
      %48 = arith.addf %45, %47 : vector<8x32xf32>
      %c0_34 = arith.constant 0 : index
      %c0_35 = arith.constant 0 : index
      %49 = vector.load %arg15[%c0_34, %c0_35] : memref<8x32xf32, #tpu.memory_space<vmem>>, vector<8x32xf32>
      tpu.vector_store %arg15[%c0_34, %c0_35], %48 {strides = array<i32>} : memref<8x32xf32, #tpu.memory_space<vmem>>, vector<8x32xf32>,
      %cst_36 = arith.constant 0.000000e+00 : f32
      %50 = vector.broadcast %cst_36 : f32 to vector<8x32xf32>
      %c0_37 = arith.constant 0 : index
      %c0_38 = arith.constant 0 : index
      %51 = vector.load %arg16[%c0_37, %c0_38] : memref<8x32xf32, #tpu.memory_space<vmem>>, vector<8x32xf32>
      tpu.vector_store %arg16[%c0_37, %c0_38], %50 {strides = array<i32>} : memref<8x32xf32, #tpu.memory_space<vmem>>, vector<8x32xf32>,
    } else {
    }
    %c0 = arith.constant 0 : index
    %c0_1 = arith.constant 0 : index
    %3 = vector.load %arg15[%c0, %c0_1] : memref<8x32xf32, #tpu.memory_space<vmem>>, vector<8x32xf32>
    %c0_2 = arith.constant 0 : index
    %c0_3 = arith.constant 0 : index
    %4 = vector.load %arg8[%c0_2, %c0_3] : memref<32x64xf32, #tpu.memory_space<vmem>>, vector<32x64xf32>
    %cst = arith.constant dense<0.000000e+00> : vector<8x64xf32>
    %5 = tpu.matmul %3, %4, %cst {dimension_numbers = #tpu.dot_dimension_numbers<[1], [0], [0], [1], [0, 0, 1, 1], [], []>} : vector<8x32xf32>, vector<32x64xf32>, vector<8x64xf32> -> vector<8x64xf32>
    %c0_4 = arith.constant 0 : index
    %c0_5 = arith.constant 0 : index
    %6 = vector.load %arg9[%c0_4, %c0_5] : memref<1x64xf32, #tpu.memory_space<vmem>>, vector<1x64xf32>
    %7 = vector.broadcast %6 : vector<1x64xf32> to vector<8x64xf32>
    %8 = arith.addf %5, %7 : vector<8x64xf32>
    %cst_6 = arith.constant 0.000000e+00 : f32
    %9 = vector.broadcast %cst_6 : f32 to vector<8x64xf32>
    %10 = arith.maximumf %8, %9 : vector<8x64xf32>
    %c0_7 = arith.constant 0 : index
    %c0_8 = arith.constant 0 : index
    %11 = vector.load %arg16[%c0_7, %c0_8] : memref<8x32xf32, #tpu.memory_space<vmem>>, vector<8x32xf32>
    %c0_9 = arith.constant 0 : index
    %c0_10 = arith.constant 0 : index
    %12 = vector.load %arg10[%c0_9, %c0_10] : memref<64x32xf32, #tpu.memory_space<vmem>>, vector<64x32xf32>
    %cst_11 = arith.constant dense<0.000000e+00> : vector<8x32xf32>
    %13 = tpu.matmul %10, %12, %cst_11 {dimension_numbers = #tpu.dot_dimension_numbers<[1], [0], [0], [1], [0, 0, 1, 1], [], []>} : vector<8x64xf32>, vector<64x32xf32>, vector<8x32xf32> -> vector<8x32xf32>
    %14 = arith.addf %11, %13 : vector<8x32xf32>
    %c0_12 = arith.constant 0 : index
    %c0_13 = arith.constant 0 : index
    %15 = vector.load %arg16[%c0_12, %c0_13] : memref<8x32xf32, #tpu.memory_space<vmem>>, vector<8x32xf32>
    tpu.vector_store %arg16[%c0_12, %c0_13], %14 {strides = array<i32>} : memref<8x32xf32, #tpu.memory_space<vmem>>, vector<8x32xf32>,
    %c0_i32_14 = arith.constant 0 : i32
    %16 = arith.cmpi eq, %arg1, %c0_i32_14 : i32
    %17 = arith.extui %16 : i1 to i32
    %c0_i32_15 = arith.constant 0 : i32
    %18 = arith.cmpi ne, %17, %c0_i32_15 : i32
    scf.if %18 {
      %c0_16 = arith.constant 0 : index
      %c0_17 = arith.constant 0 : index
      %19 = vector.load %arg16[%c0_16, %c0_17] : memref<8x32xf32, #tpu.memory_space<vmem>>, vector<8x32xf32>
      %c0_18 = arith.constant 0 : index
      %c0_19 = arith.constant 0 : index
      %20 = vector.load %arg11[%c0_18, %c0_19] : memref<1x32xf32, #tpu.memory_space<vmem>>, vector<1x32xf32>
      %21 = vector.broadcast %20 : vector<1x32xf32> to vector<8x32xf32>
      %22 = arith.addf %19, %21 : vector<8x32xf32>
      %c0_20 = arith.constant 0 : index
      %c0_21 = arith.constant 0 : index
      %23 = vector.load %arg15[%c0_20, %c0_21] : memref<8x32xf32, #tpu.memory_space<vmem>>, vector<8x32xf32>
      %24 = arith.addf %22, %23 : vector<8x32xf32>
      %cst_22 = arith.constant dense<0.000000e+00> : vector<8xf32>
      %25 = vector.multi_reduction <add>, %24, %cst_22 [1] : vector<8x32xf32> to vector<8xf32>
      %26 = vector.shape_cast %25 : vector<8xf32> to vector<8x1xf32>
      %cst_23 = arith.constant 3.200000e+01 : f32
      %27 = vector.broadcast %cst_23 : f32 to vector<8x1xf32>
      %28 = arith.divf %26, %27 : vector<8x1xf32>
      %29 = vector.broadcast %28 : vector<8x1xf32> to vector<8x32xf32>
      %30 = arith.subf %24, %29 : vector<8x32xf32>
      %31 = arith.mulf %30, %30 : vector<8x32xf32>
      %cst_24 = arith.constant dense<0.000000e+00> : vector<8xf32>
      %32 = vector.multi_reduction <add>, %31, %cst_24 [1] : vector<8x32xf32> to vector<8xf32>
      %33 = vector.shape_cast %32 : vector<8xf32> to vector<8x1xf32>
      %cst_25 = arith.constant 3.200000e+01 : f32
      %34 = vector.broadcast %cst_25 : f32 to vector<8x1xf32>
      %35 = arith.divf %33, %34 : vector<8x1xf32>
      %cst_26 = arith.constant 9.99999974E-6 : f32
      %36 = vector.broadcast %cst_26 : f32 to vector<8x1xf32>
      %37 = arith.addf %35, %36 : vector<8x1xf32>
      %38 = math.rsqrt %37 : vector<8x1xf32>
      %39 = vector.broadcast %38 : vector<8x1xf32> to vector<8x32xf32>
      %40 = arith.mulf %30, %39 : vector<8x32xf32>
      %c0_27 = arith.constant 0 : index
      %c0_28 = arith.constant 0 : index
      %41 = vector.load %arg12[%c0_27, %c0_28] : memref<1x32xf32, #tpu.memory_space<vmem>>, vector<1x32xf32>
      %42 = vector.broadcast %41 : vector<1x32xf32> to vector<8x32xf32>
      %43 = arith.mulf %40, %42 : vector<8x32xf32>
      %c0_29 = arith.constant 0 : index
      %c0_30 = arith.constant 0 : index
      %44 = vector.load %arg13[%c0_29, %c0_30] : memref<1x32xf32, #tpu.memory_space<vmem>>, vector<1x32xf32>
      %45 = vector.broadcast %44 : vector<1x32xf32> to vector<8x32xf32>
      %46 = arith.addf %43, %45 : vector<8x32xf32>
      %c0_31 = arith.constant 0 : index
      %c0_32 = arith.constant 0 : index
      %47 = vector.load %arg14[%c0_31, %c0_32] : memref<8x32xf32, #tpu.memory_space<vmem>>, vector<8x32xf32>
      tpu.vector_store %arg14[%c0_31, %c0_32], %46 {strides = array<i32>} : memref<8x32xf32, #tpu.memory_space<vmem>>, vector<8x32xf32>,
    } else {
    }
    return
  }
  func.func @transform_0(%arg0: i32, %arg1: i32) -> (i32, i32) {
    %c0_i32 = arith.constant 0 : i32
    %c0_i32_0 = arith.constant 0 : i32
    return %arg0, %c0_i32 : i32, i32
  }
  func.func @transform_1(%arg0: i32, %arg1: i32) -> (i32, i32) {
    %c0_i32 = arith.constant 0 : i32
    %c0_i32_0 = arith.constant 0 : i32
    return %arg0, %c0_i32 : i32, i32
  }
  func.func @transform_2(%arg0: i32, %arg1: i32) -> (i32, i32) {
    %c0_i32 = arith.constant 0 : i32
    %c0_i32_0 = arith.constant 0 : i32
    %c0_i32_1 = arith.constant 0 : i32
    return %c0_i32, %c0_i32_0 : i32, i32
  }
  func.func @transform_3(%arg0: i32, %arg1: i32) -> (i32, i32) {
    %c0_i32 = arith.constant 0 : i32
    %c0_i32_0 = arith.constant 0 : i32
    %c0_i32_1 = arith.constant 0 : i32
    return %c0_i32, %c0_i32_0 : i32, i32
  }
  func.func @transform_4(%arg0: i32, %arg1: i32) -> (i32, i32) {
    %c0_i32 = arith.constant 0 : i32
    %c0_i32_0 = arith.constant 0 : i32
    %c0_i32_1 = arith.constant 0 : i32
    return %c0_i32, %c0_i32_0 : i32, i32
  }
  func.func @transform_5(%arg0: i32, %arg1: i32) -> (i32, i32) {
    %c0_i32 = arith.constant 0 : i32
    %c0_i32_0 = arith.constant 0 : i32
    %c0_i32_1 = arith.constant 0 : i32
    return %c0_i32, %c0_i32_0 : i32, i32
  }
  func.func @transform_6(%arg0: i32, %arg1: i32) -> (i32, i32) {
    %c0_i32 = arith.constant 0 : i32
    %c0_i32_0 = arith.constant 0 : i32
    return %c0_i32, %arg1 : i32, i32
  }
  func.func @transform_7(%arg0: i32, %arg1: i32) -> (i32, i32) {
    %c0_i32 = arith.constant 0 : i32
    %c0_i32_0 = arith.constant 0 : i32
    return %c0_i32, %arg1 : i32, i32
  }
  func.func @transform_8(%arg0: i32, %arg1: i32) -> (i32, i32) {
    %c0_i32 = arith.constant 0 : i32
    %c0_i32_0 = arith.constant 0 : i32
    return %arg1, %c0_i32 : i32, i32
  }
  func.func @transform_9(%arg0: i32, %arg1: i32) -> (i32, i32) {
    %c0_i32 = arith.constant 0 : i32
    %c0_i32_0 = arith.constant 0 : i32
    %c0_i32_1 = arith.constant 0 : i32
    return %c0_i32, %c0_i32_0 : i32, i32
  }
  func.func @transform_10(%arg0: i32, %arg1: i32) -> (i32, i32) {
    %c0_i32 = arith.constant 0 : i32
    %c0_i32_0 = arith.constant 0 : i32
    %c0_i32_1 = arith.constant 0 : i32
    return %c0_i32, %c0_i32_0 : i32, i32
  }
  func.func @transform_11(%arg0: i32, %arg1: i32) -> (i32, i32) {
    %c0_i32 = arith.constant 0 : i32
    %c0_i32_0 = arith.constant 0 : i32
    %c0_i32_1 = arith.constant 0 : i32
    return %c0_i32, %c0_i32_0 : i32, i32
  }
  func.func @transform_12(%arg0: i32, %arg1: i32) -> (i32, i32) {
    %c0_i32 = arith.constant 0 : i32
    %c0_i32_0 = arith.constant 0 : i32
    return %arg0, %c0_i32 : i32, i32
  }
}

module attributes {stable_mosaic.version = 11 : i64} {
  func.func @_qkv_kernel(%arg0: i32, %arg1: memref<8x32xf32, #tpu.memory_space<vmem>>, %arg2: memref<32x32xf32, #tpu.memory_space<vmem>>, %arg3: memref<1x32xf32, #tpu.memory_space<vmem>>, %arg4: memref<32x32xf32, #tpu.memory_space<vmem>>, %arg5: memref<1x32xf32, #tpu.memory_space<vmem>>, %arg6: memref<32x32xf32, #tpu.memory_space<vmem>>, %arg7: memref<1x32xf32, #tpu.memory_space<vmem>>, %arg8: memref<8x32xf32, #tpu.memory_space<vmem>>, %arg9: memref<8x32xf32, #tpu.memory_space<vmem>>, %arg10: memref<8x32xf32, #tpu.memory_space<vmem>>) attributes {dimension_semantics = [#tpu.dimension_semantics<parallel>], iteration_bounds = array<i64: 2>, scalar_prefetch = 0 : i64, scratch_operands = 0 : i64, tpu.core_type = #tpu.core_type<tc>, window_params = [{transform_indices = @transform_0, window_bounds = array<i64: 8, 32>}, {pipeline_mode = #tpu.pipeline_mode<synchronous>, transform_indices = @transform_1, window_bounds = array<i64: 32, 32>}, {pipeline_mode = #tpu.pipeline_mode<synchronous>, transform_indices = @transform_2, window_bounds = array<i64: 1, 32>}, {pipeline_mode = #tpu.pipeline_mode<synchronous>, transform_indices = @transform_3, window_bounds = array<i64: 32, 32>}, {pipeline_mode = #tpu.pipeline_mode<synchronous>, transform_indices = @transform_4, window_bounds = array<i64: 1, 32>}, {pipeline_mode = #tpu.pipeline_mode<synchronous>, transform_indices = @transform_5, window_bounds = array<i64: 32, 32>}, {pipeline_mode = #tpu.pipeline_mode<synchronous>, transform_indices = @transform_6, window_bounds = array<i64: 1, 32>}, {transform_indices = @transform_7, window_bounds = array<i64: 8, 32>}, {transform_indices = @transform_8, window_bounds = array<i64: 8, 32>}, {transform_indices = @transform_9, window_bounds = array<i64: 8, 32>}]} {
    %c0 = arith.constant 0 : index
    %c0_0 = arith.constant 0 : index
    %0 = vector.load %arg1[%c0, %c0_0] : memref<8x32xf32, #tpu.memory_space<vmem>>, vector<8x32xf32>
    %c0_1 = arith.constant 0 : index
    %c0_2 = arith.constant 0 : index
    %1 = vector.load %arg2[%c0_1, %c0_2] : memref<32x32xf32, #tpu.memory_space<vmem>>, vector<32x32xf32>
    %cst = arith.constant dense<0.000000e+00> : vector<8x32xf32>
    %2 = tpu.matmul %0, %1, %cst {dimension_numbers = #tpu.dot_dimension_numbers<[1], [0], [0], [1], [0, 0, 1, 1], [], []>} : vector<8x32xf32>, vector<32x32xf32>, vector<8x32xf32> -> vector<8x32xf32>
    %c0_3 = arith.constant 0 : index
    %c0_4 = arith.constant 0 : index
    %3 = vector.load %arg3[%c0_3, %c0_4] : memref<1x32xf32, #tpu.memory_space<vmem>>, vector<1x32xf32>
    %4 = vector.broadcast %3 : vector<1x32xf32> to vector<8x32xf32>
    %5 = arith.addf %2, %4 : vector<8x32xf32>
    %c0_5 = arith.constant 0 : index
    %c0_6 = arith.constant 0 : index
    %6 = vector.load %arg8[%c0_5, %c0_6] : memref<8x32xf32, #tpu.memory_space<vmem>>, vector<8x32xf32>
    tpu.vector_store %arg8[%c0_5, %c0_6], %5 {strides = array<i32>} : memref<8x32xf32, #tpu.memory_space<vmem>>, vector<8x32xf32>,
    %c0_7 = arith.constant 0 : index
    %c0_8 = arith.constant 0 : index
    %7 = vector.load %arg4[%c0_7, %c0_8] : memref<32x32xf32, #tpu.memory_space<vmem>>, vector<32x32xf32>
    %cst_9 = arith.constant dense<0.000000e+00> : vector<8x32xf32>
    %8 = tpu.matmul %0, %7, %cst_9 {dimension_numbers = #tpu.dot_dimension_numbers<[1], [0], [0], [1], [0, 0, 1, 1], [], []>} : vector<8x32xf32>, vector<32x32xf32>, vector<8x32xf32> -> vector<8x32xf32>
    %c0_10 = arith.constant 0 : index
    %c0_11 = arith.constant 0 : index
    %9 = vector.load %arg5[%c0_10, %c0_11] : memref<1x32xf32, #tpu.memory_space<vmem>>, vector<1x32xf32>
    %10 = vector.broadcast %9 : vector<1x32xf32> to vector<8x32xf32>
    %11 = arith.addf %8, %10 : vector<8x32xf32>
    %c0_12 = arith.constant 0 : index
    %c0_13 = arith.constant 0 : index
    %12 = vector.load %arg9[%c0_12, %c0_13] : memref<8x32xf32, #tpu.memory_space<vmem>>, vector<8x32xf32>
    tpu.vector_store %arg9[%c0_12, %c0_13], %11 {strides = array<i32>} : memref<8x32xf32, #tpu.memory_space<vmem>>, vector<8x32xf32>,
    %c0_14 = arith.constant 0 : index
    %c0_15 = arith.constant 0 : index
    %13 = vector.load %arg6[%c0_14, %c0_15] : memref<32x32xf32, #tpu.memory_space<vmem>>, vector<32x32xf32>
    %cst_16 = arith.constant dense<0.000000e+00> : vector<8x32xf32>
    %14 = tpu.matmul %0, %13, %cst_16 {dimension_numbers = #tpu.dot_dimension_numbers<[1], [0], [0], [1], [0, 0, 1, 1], [], []>} : vector<8x32xf32>, vector<32x32xf32>, vector<8x32xf32> -> vector<8x32xf32>
    %c0_17 = arith.constant 0 : index
    %c0_18 = arith.constant 0 : index
    %15 = vector.load %arg7[%c0_17, %c0_18] : memref<1x32xf32, #tpu.memory_space<vmem>>, vector<1x32xf32>
    %16 = vector.broadcast %15 : vector<1x32xf32> to vector<8x32xf32>
    %17 = arith.addf %14, %16 : vector<8x32xf32>
    %c0_19 = arith.constant 0 : index
    %c0_20 = arith.constant 0 : index
    %18 = vector.load %arg10[%c0_19, %c0_20] : memref<8x32xf32, #tpu.memory_space<vmem>>, vector<8x32xf32>
    tpu.vector_store %arg10[%c0_19, %c0_20], %17 {strides = array<i32>} : memref<8x32xf32, #tpu.memory_space<vmem>>, vector<8x32xf32>,
    return
  }
  func.func @transform_0(%arg0: i32) -> (i32, i32) {
    %c0_i32 = arith.constant 0 : i32
    %c0_i32_0 = arith.constant 0 : i32
    return %arg0, %c0_i32 : i32, i32
  }
  func.func @transform_1(%arg0: i32) -> (i32, i32) {
    %c0_i32 = arith.constant 0 : i32
    %c0_i32_0 = arith.constant 0 : i32
    %c0_i32_1 = arith.constant 0 : i32
    return %c0_i32, %c0_i32_0 : i32, i32
  }
  func.func @transform_2(%arg0: i32) -> (i32, i32) {
    %c0_i32 = arith.constant 0 : i32
    %c0_i32_0 = arith.constant 0 : i32
    %c0_i32_1 = arith.constant 0 : i32
    return %c0_i32, %c0_i32_0 : i32, i32
  }
  func.func @transform_3(%arg0: i32) -> (i32, i32) {
    %c0_i32 = arith.constant 0 : i32
    %c0_i32_0 = arith.constant 0 : i32
    %c0_i32_1 = arith.constant 0 : i32
    return %c0_i32, %c0_i32_0 : i32, i32
  }
  func.func @transform_4(%arg0: i32) -> (i32, i32) {
    %c0_i32 = arith.constant 0 : i32
    %c0_i32_0 = arith.constant 0 : i32
    %c0_i32_1 = arith.constant 0 : i32
    return %c0_i32, %c0_i32_0 : i32, i32
  }
  func.func @transform_5(%arg0: i32) -> (i32, i32) {
    %c0_i32 = arith.constant 0 : i32
    %c0_i32_0 = arith.constant 0 : i32
    %c0_i32_1 = arith.constant 0 : i32
    return %c0_i32, %c0_i32_0 : i32, i32
  }
  func.func @transform_6(%arg0: i32) -> (i32, i32) {
    %c0_i32 = arith.constant 0 : i32
    %c0_i32_0 = arith.constant 0 : i32
    %c0_i32_1 = arith.constant 0 : i32
    return %c0_i32, %c0_i32_0 : i32, i32
  }
  func.func @transform_7(%arg0: i32) -> (i32, i32) {
    %c0_i32 = arith.constant 0 : i32
    %c0_i32_0 = arith.constant 0 : i32
    return %arg0, %c0_i32 : i32, i32
  }
  func.func @transform_8(%arg0: i32) -> (i32, i32) {
    %c0_i32 = arith.constant 0 : i32
    %c0_i32_0 = arith.constant 0 : i32
    return %arg0, %c0_i32 : i32, i32
  }
  func.func @transform_9(%arg0: i32) -> (i32, i32) {
    %c0_i32 = arith.constant 0 : i32
    %c0_i32_0 = arith.constant 0 : i32
    return %arg0, %c0_i32 : i32, i32
  }
}

module attributes {stable_mosaic.version = 11 : i64} {
  func.func @_proj_ln_ffn_ln_kernel(%arg0: i32, %arg1: i32, %arg2: memref<8x32xf32, #tpu.memory_space<vmem>>, %arg3: memref<8x32xf32, #tpu.memory_space<vmem>>, %arg4: memref<32x32xf32, #tpu.memory_space<vmem>>, %arg5: memref<1x32xf32, #tpu.memory_space<vmem>>, %arg6: memref<1x32xf32, #tpu.memory_space<vmem>>, %arg7: memref<1x32xf32, #tpu.memory_space<vmem>>, %arg8: memref<32x64xf32, #tpu.memory_space<vmem>>, %arg9: memref<1x64xf32, #tpu.memory_space<vmem>>, %arg10: memref<64x32xf32, #tpu.memory_space<vmem>>, %arg11: memref<1x32xf32, #tpu.memory_space<vmem>>, %arg12: memref<1x32xf32, #tpu.memory_space<vmem>>, %arg13: memref<1x32xf32, #tpu.memory_space<vmem>>, %arg14: memref<8x32xf32, #tpu.memory_space<vmem>>, %arg15: memref<8x32xf32, #tpu.memory_space<vmem>>, %arg16: memref<8x32xf32, #tpu.memory_space<vmem>>) attributes {dimension_semantics = [#tpu.dimension_semantics<parallel>, #tpu.dimension_semantics<arbitrary>], iteration_bounds = array<i64: 2, 1>, scalar_prefetch = 0 : i64, scratch_operands = 2 : i64, tpu.core_type = #tpu.core_type<tc>, window_params = [{transform_indices = @transform_0, window_bounds = array<i64: 8, 32>}, {transform_indices = @transform_1, window_bounds = array<i64: 8, 32>}, {pipeline_mode = #tpu.pipeline_mode<synchronous>, transform_indices = @transform_2, window_bounds = array<i64: 32, 32>}, {pipeline_mode = #tpu.pipeline_mode<synchronous>, transform_indices = @transform_3, window_bounds = array<i64: 1, 32>}, {pipeline_mode = #tpu.pipeline_mode<synchronous>, transform_indices = @transform_4, window_bounds = array<i64: 1, 32>}, {pipeline_mode = #tpu.pipeline_mode<synchronous>, transform_indices = @transform_5, window_bounds = array<i64: 1, 32>}, {transform_indices = @transform_6, window_bounds = array<i64: 32, 64>}, {transform_indices = @transform_7, window_bounds = array<i64: 1, 64>}, {transform_indices = @transform_8, window_bounds = array<i64: 64, 32>}, {pipeline_mode = #tpu.pipeline_mode<synchronous>, transform_indices = @transform_9, window_bounds = array<i64: 1, 32>}, {pipeline_mode = #tpu.pipeline_mode<synchronous>, transform_indices = @transform_10, window_bounds = array<i64: 1, 32>}, {pipeline_mode = #tpu.pipeline_mode<synchronous>, transform_indices = @transform_11, window_bounds = array<i64: 1, 32>}, {transform_indices = @transform_12, window_bounds = array<i64: 8, 32>}]} {
    %c0_i32 = arith.constant 0 : i32
    %0 = arith.cmpi eq, %arg1, %c0_i32 : i32
    %1 = arith.extui %0 : i1 to i32
    %c0_i32_0 = arith.constant 0 : i32
    %2 = arith.cmpi ne, %1, %c0_i32_0 : i32
    scf.if %2 {
      %c0_16 = arith.constant 0 : index
      %c0_17 = arith.constant 0 : index
      %19 = vector.load %arg2[%c0_16, %c0_17] : memref<8x32xf32, #tpu.memory_space<vmem>>, vector<8x32xf32>
      %c0_18 = arith.constant 0 : index
      %c0_19 = arith.constant 0 : index
      %20 = vector.load %arg4[%c0_18, %c0_19] : memref<32x32xf32, #tpu.memory_space<vmem>>, vector<32x32xf32>
      %cst_20 = arith.constant dense<0.000000e+00> : vector<8x32xf32>
      %21 = tpu.matmul %19, %20, %cst_20 {dimension_numbers = #tpu.dot_dimension_numbers<[1], [0], [0], [1], [0, 0, 1, 1], [], []>} : vector<8x32xf32>, vector<32x32xf32>, vector<8x32xf32> -> vector<8x32xf32>
      %c0_21 = arith.constant 0 : index
      %c0_22 = arith.constant 0 : index
      %22 = vector.load %arg5[%c0_21, %c0_22] : memref<1x32xf32, #tpu.memory_space<vmem>>, vector<1x32xf32>
      %23 = vector.broadcast %22 : vector<1x32xf32> to vector<8x32xf32>
      %24 = arith.addf %21, %23 : vector<8x32xf32>
      %c0_23 = arith.constant 0 : index
      %c0_24 = arith.constant 0 : index
      %25 = vector.load %arg3[%c0_23, %c0_24] : memref<8x32xf32, #tpu.memory_space<vmem>>, vector<8x32xf32>
      %26 = arith.addf %24, %25 : vector<8x32xf32>
      %cst_25 = arith.constant dense<0.000000e+00> : vector<8xf32>
      %27 = vector.multi_reduction <add>, %26, %cst_25 [1] : vector<8x32xf32> to vector<8xf32>
      %28 = vector.shape_cast %27 : vector<8xf32> to vector<8x1xf32>
      %cst_26 = arith.constant 3.200000e+01 : f32
      %29 = vector.broadcast %cst_26 : f32 to vector<8x1xf32>
      %30 = arith.divf %28, %29 : vector<8x1xf32>
      %31 = vector.broadcast %30 : vector<8x1xf32> to vector<8x32xf32>
      %32 = arith.subf %26, %31 : vector<8x32xf32>
      %33 = arith.mulf %32, %32 : vector<8x32xf32>
      %cst_27 = arith.constant dense<0.000000e+00> : vector<8xf32>
      %34 = vector.multi_reduction <add>, %33, %cst_27 [1] : vector<8x32xf32> to vector<8xf32>
      %35 = vector.shape_cast %34 : vector<8xf32> to vector<8x1xf32>
      %cst_28 = arith.constant 3.200000e+01 : f32
      %36 = vector.broadcast %cst_28 : f32 to vector<8x1xf32>
      %37 = arith.divf %35, %36 : vector<8x1xf32>
      %cst_29 = arith.constant 9.99999974E-6 : f32
      %38 = vector.broadcast %cst_29 : f32 to vector<8x1xf32>
      %39 = arith.addf %37, %38 : vector<8x1xf32>
      %40 = math.rsqrt %39 : vector<8x1xf32>
      %41 = vector.broadcast %40 : vector<8x1xf32> to vector<8x32xf32>
      %42 = arith.mulf %32, %41 : vector<8x32xf32>
      %c0_30 = arith.constant 0 : index
      %c0_31 = arith.constant 0 : index
      %43 = vector.load %arg6[%c0_30, %c0_31] : memref<1x32xf32, #tpu.memory_space<vmem>>, vector<1x32xf32>
      %44 = vector.broadcast %43 : vector<1x32xf32> to vector<8x32xf32>
      %45 = arith.mulf %42, %44 : vector<8x32xf32>
      %c0_32 = arith.constant 0 : index
      %c0_33 = arith.constant 0 : index
      %46 = vector.load %arg7[%c0_32, %c0_33] : memref<1x32xf32, #tpu.memory_space<vmem>>, vector<1x32xf32>
      %47 = vector.broadcast %46 : vector<1x32xf32> to vector<8x32xf32>
      %48 = arith.addf %45, %47 : vector<8x32xf32>
      %c0_34 = arith.constant 0 : index
      %c0_35 = arith.constant 0 : index
      %49 = vector.load %arg15[%c0_34, %c0_35] : memref<8x32xf32, #tpu.memory_space<vmem>>, vector<8x32xf32>
      tpu.vector_store %arg15[%c0_34, %c0_35], %48 {strides = array<i32>} : memref<8x32xf32, #tpu.memory_space<vmem>>, vector<8x32xf32>,
      %cst_36 = arith.constant 0.000000e+00 : f32
      %50 = vector.broadcast %cst_36 : f32 to vector<8x32xf32>
      %c0_37 = arith.constant 0 : index
      %c0_38 = arith.constant 0 : index
      %51 = vector.load %arg16[%c0_37, %c0_38] : memref<8x32xf32, #tpu.memory_space<vmem>>, vector<8x32xf32>
      tpu.vector_store %arg16[%c0_37, %c0_38], %50 {strides = array<i32>} : memref<8x32xf32, #tpu.memory_space<vmem>>, vector<8x32xf32>,
    } else {
    }
    %c0 = arith.constant 0 : index
    %c0_1 = arith.constant 0 : index
    %3 = vector.load %arg15[%c0, %c0_1] : memref<8x32xf32, #tpu.memory_space<vmem>>, vector<8x32xf32>
    %c0_2 = arith.constant 0 : index
    %c0_3 = arith.constant 0 : index
    %4 = vector.load %arg8[%c0_2, %c0_3] : memref<32x64xf32, #tpu.memory_space<vmem>>, vector<32x64xf32>
    %cst = arith.constant dense<0.000000e+00> : vector<8x64xf32>
    %5 = tpu.matmul %3, %4, %cst {dimension_numbers = #tpu.dot_dimension_numbers<[1], [0], [0], [1], [0, 0, 1, 1], [], []>} : vector<8x32xf32>, vector<32x64xf32>, vector<8x64xf32> -> vector<8x64xf32>
    %c0_4 = arith.constant 0 : index
    %c0_5 = arith.constant 0 : index
    %6 = vector.load %arg9[%c0_4, %c0_5] : memref<1x64xf32, #tpu.memory_space<vmem>>, vector<1x64xf32>
    %7 = vector.broadcast %6 : vector<1x64xf32> to vector<8x64xf32>
    %8 = arith.addf %5, %7 : vector<8x64xf32>
    %cst_6 = arith.constant 0.000000e+00 : f32
    %9 = vector.broadcast %cst_6 : f32 to vector<8x64xf32>
    %10 = arith.maximumf %8, %9 : vector<8x64xf32>
    %c0_7 = arith.constant 0 : index
    %c0_8 = arith.constant 0 : index
    %11 = vector.load %arg16[%c0_7, %c0_8] : memref<8x32xf32, #tpu.memory_space<vmem>>, vector<8x32xf32>
    %c0_9 = arith.constant 0 : index
    %c0_10 = arith.constant 0 : index
    %12 = vector.load %arg10[%c0_9, %c0_10] : memref<64x32xf32, #tpu.memory_space<vmem>>, vector<64x32xf32>
    %cst_11 = arith.constant dense<0.000000e+00> : vector<8x32xf32>
    %13 = tpu.matmul %10, %12, %cst_11 {dimension_numbers = #tpu.dot_dimension_numbers<[1], [0], [0], [1], [0, 0, 1, 1], [], []>} : vector<8x64xf32>, vector<64x32xf32>, vector<8x32xf32> -> vector<8x32xf32>
    %14 = arith.addf %11, %13 : vector<8x32xf32>
    %c0_12 = arith.constant 0 : index
    %c0_13 = arith.constant 0 : index
    %15 = vector.load %arg16[%c0_12, %c0_13] : memref<8x32xf32, #tpu.memory_space<vmem>>, vector<8x32xf32>
    tpu.vector_store %arg16[%c0_12, %c0_13], %14 {strides = array<i32>} : memref<8x32xf32, #tpu.memory_space<vmem>>, vector<8x32xf32>,
    %c0_i32_14 = arith.constant 0 : i32
    %16 = arith.cmpi eq, %arg1, %c0_i32_14 : i32
    %17 = arith.extui %16 : i1 to i32
    %c0_i32_15 = arith.constant 0 : i32
    %18 = arith.cmpi ne, %17, %c0_i32_15 : i32
    scf.if %18 {
      %c0_16 = arith.constant 0 : index
      %c0_17 = arith.constant 0 : index
      %19 = vector.load %arg16[%c0_16, %c0_17] : memref<8x32xf32, #tpu.memory_space<vmem>>, vector<8x32xf32>
      %c0_18 = arith.constant 0 : index
      %c0_19 = arith.constant 0 : index
      %20 = vector.load %arg11[%c0_18, %c0_19] : memref<1x32xf32, #tpu.memory_space<vmem>>, vector<1x32xf32>
      %21 = vector.broadcast %20 : vector<1x32xf32> to vector<8x32xf32>
      %22 = arith.addf %19, %21 : vector<8x32xf32>
      %c0_20 = arith.constant 0 : index
      %c0_21 = arith.constant 0 : index
      %23 = vector.load %arg15[%c0_20, %c0_21] : memref<8x32xf32, #tpu.memory_space<vmem>>, vector<8x32xf32>
      %24 = arith.addf %22, %23 : vector<8x32xf32>
      %cst_22 = arith.constant dense<0.000000e+00> : vector<8xf32>
      %25 = vector.multi_reduction <add>, %24, %cst_22 [1] : vector<8x32xf32> to vector<8xf32>
      %26 = vector.shape_cast %25 : vector<8xf32> to vector<8x1xf32>
      %cst_23 = arith.constant 3.200000e+01 : f32
      %27 = vector.broadcast %cst_23 : f32 to vector<8x1xf32>
      %28 = arith.divf %26, %27 : vector<8x1xf32>
      %29 = vector.broadcast %28 : vector<8x1xf32> to vector<8x32xf32>
      %30 = arith.subf %24, %29 : vector<8x32xf32>
      %31 = arith.mulf %30, %30 : vector<8x32xf32>
      %cst_24 = arith.constant dense<0.000000e+00> : vector<8xf32>
      %32 = vector.multi_reduction <add>, %31, %cst_24 [1] : vector<8x32xf32> to vector<8xf32>
      %33 = vector.shape_cast %32 : vector<8xf32> to vector<8x1xf32>
      %cst_25 = arith.constant 3.200000e+01 : f32
      %34 = vector.broadcast %cst_25 : f32 to vector<8x1xf32>
      %35 = arith.divf %33, %34 : vector<8x1xf32>
      %cst_26 = arith.constant 9.99999974E-6 : f32
      %36 = vector.broadcast %cst_26 : f32 to vector<8x1xf32>
      %37 = arith.addf %35, %36 : vector<8x1xf32>
      %38 = math.rsqrt %37 : vector<8x1xf32>
      %39 = vector.broadcast %38 : vector<8x1xf32> to vector<8x32xf32>
      %40 = arith.mulf %30, %39 : vector<8x32xf32>
      %c0_27 = arith.constant 0 : index
      %c0_28 = arith.constant 0 : index
      %41 = vector.load %arg12[%c0_27, %c0_28] : memref<1x32xf32, #tpu.memory_space<vmem>>, vector<1x32xf32>
      %42 = vector.broadcast %41 : vector<1x32xf32> to vector<8x32xf32>
      %43 = arith.mulf %40, %42 : vector<8x32xf32>
      %c0_29 = arith.constant 0 : index
      %c0_30 = arith.constant 0 : index
      %44 = vector.load %arg13[%c0_29, %c0_30] : memref<1x32xf32, #tpu.memory_space<vmem>>, vector<1x32xf32>
      %45 = vector.broadcast %44 : vector<1x32xf32> to vector<8x32xf32>
      %46 = arith.addf %43, %45 : vector<8x32xf32>
      %c0_31 = arith.constant 0 : index
      %c0_32 = arith.constant 0 : index
      %47 = vector.load %arg14[%c0_31, %c0_32] : memref<8x32xf32, #tpu.memory_space<vmem>>, vector<8x32xf32>
      tpu.vector_store %arg14[%c0_31, %c0_32], %46 {strides = array<i32>} : memref<8x32xf32, #tpu.memory_space<vmem>>, vector<8x32xf32>,
    } else {
    }
    return
  }
  func.func @transform_0(%arg0: i32, %arg1: i32) -> (i32, i32) {
    %c0_i32 = arith.constant 0 : i32
    %c0_i32_0 = arith.constant 0 : i32
    return %arg0, %c0_i32 : i32, i32
  }
  func.func @transform_1(%arg0: i32, %arg1: i32) -> (i32, i32) {
    %c0_i32 = arith.constant 0 : i32
    %c0_i32_0 = arith.constant 0 : i32
    return %arg0, %c0_i32 : i32, i32
  }
  func.func @transform_2(%arg0: i32, %arg1: i32) -> (i32, i32) {
    %c0_i32 = arith.constant 0 : i32
    %c0_i32_0 = arith.constant 0 : i32
    %c0_i32_1 = arith.constant 0 : i32
    return %c0_i32, %c0_i32_0 : i32, i32
  }
  func.func @transform_3(%arg0: i32, %arg1: i32) -> (i32, i32) {
    %c0_i32 = arith.constant 0 : i32
    %c0_i32_0 = arith.constant 0 : i32
    %c0_i32_1 = arith.constant 0 : i32
    return %c0_i32, %c0_i32_0 : i32, i32
  }
  func.func @transform_4(%arg0: i32, %arg1: i32) -> (i32, i32) {
    %c0_i32 = arith.constant 0 : i32
    %c0_i32_0 = arith.constant 0 : i32
    %c0_i32_1 = arith.constant 0 : i32
    return %c0_i32, %c0_i32_0 : i32, i32
  }
  func.func @transform_5(%arg0: i32, %arg1: i32) -> (i32, i32) {
    %c0_i32 = arith.constant 0 : i32
    %c0_i32_0 = arith.constant 0 : i32
    %c0_i32_1 = arith.constant 0 : i32
    return %c0_i32, %c0_i32_0 : i32, i32
  }
  func.func @transform_6(%arg0: i32, %arg1: i32) -> (i32, i32) {
    %c0_i32 = arith.constant 0 : i32
    %c0_i32_0 = arith.constant 0 : i32
    return %c0_i32, %arg1 : i32, i32
  }
  func.func @transform_7(%arg0: i32, %arg1: i32) -> (i32, i32) {
    %c0_i32 = arith.constant 0 : i32
    %c0_i32_0 = arith.constant 0 : i32
    return %c0_i32, %arg1 : i32, i32
  }
  func.func @transform_8(%arg0: i32, %arg1: i32) -> (i32, i32) {
    %c0_i32 = arith.constant 0 : i32
    %c0_i32_0 = arith.constant 0 : i32
    return %arg1, %c0_i32 : i32, i32
  }
  func.func @transform_9(%arg0: i32, %arg1: i32) -> (i32, i32) {
    %c0_i32 = arith.constant 0 : i32
    %c0_i32_0 = arith.constant 0 : i32
    %c0_i32_1 = arith.constant 0 : i32
    return %c0_i32, %c0_i32_0 : i32, i32
  }
  func.func @transform_10(%arg0: i32, %arg1: i32) -> (i32, i32) {
    %c0_i32 = arith.constant 0 : i32
    %c0_i32_0 = arith.constant 0 : i32
    %c0_i32_1 = arith.constant 0 : i32
    return %c0_i32, %c0_i32_0 : i32, i32
  }
  func.func @transform_11(%arg0: i32, %arg1: i32) -> (i32, i32) {
    %c0_i32 = arith.constant 0 : i32
    %c0_i32_0 = arith.constant 0 : i32
    %c0_i32_1 = arith.constant 0 : i32
    return %c0_i32, %c0_i32_0 : i32, i32
  }
  func.func @transform_12(%arg0: i32, %arg1: i32) -> (i32, i32) {
    %c0_i32 = arith.constant 0 : i32
    %c0_i32_0 = arith.constant 0 : i32
    return %arg0, %c0_i32 : i32, i32
  }
}

</mosaic_0001>

<bundles_post_ra>
// kernel: encoder_forward.7
= control target key start
LH: loop header
LB: loop body
LE: loop exit
PB: predicated region body
PF: predicated region fallthrough
CT: control target
= control target key end

     0   :  { %s689_s12 = smov 0   ;;  %s691_s13 = smov 0   ;;  %s746_s0 = inlined_call_operand.vmem [shape: f32[8,8,8], index: 0, kind: input, shape index: {}]   ;;  %s747_s1 = inlined_call_operand.vmem [shape: f32[8,8,8], index: 1, kind: input, shape index: {}]   ;;  %s748_s2 = inlined_call_operand.vmem [shape: f32[8,8,8], index: 2, kind: input, shape index: {}]   ;;  %s749_s3 = inlined_call_operand.vmem [shape: f32[8,8,8], index: 3, kind: output, shape index: {}]  }
   0x1   :  { %s693_s14 = smov 0  }
   0x2 LB: > { %s32_s15 = sadd.s32 1, %s659_s13  ;;  %p581_p0 = scmp.ge.s32.totalorder %s663_s14, 1  ;;  %s663_s14 = sphi %s693_s14, %s13_s14   ;;  %s659_s13 = sphi %s691_s13, %s751_s13   ;;  %s655_s12 = sphi %s689_s12, %s750_s12  }
   0x3   : > { %p34_p1 = scmp.ge.s32.totalorder %s32_s15, 8  ;;  %p190_p2 = scmp.lt.s32.totalorder %s663_s14, 9 }
   0x5   : > { %s753_s15 = smov (%p34_p1, %s32_s15), 0  ;;  %p191_p3 = pnand %p581_p0, %p190_p2 }
   0x6   : > { %p232_p4 = scmp.lt.s32.totalorder (!%p191_p3), %s655_s12, 7  ;;  %vm267_vm0 = vcmask (!%p191_p3), 64512   ;;  %v665_v0 = vmov (!%p191_p3), 0.0   ;;  %vm666_vm1 = vmmov (!%p191_p3), 0   ;;  %vm264_vm2 = vcmask (!%p191_p3), 7168  }
   0x7   : > { %194 = sbr.rel (%p191_p3) target bundleno = 816 (0x330), region = 32  ;;  %595 = vmatprep.subr.mxu0 (!%p191_p3), %v665_v0  ;;  %268 = vst.msk [vmem:[#allocation4] sm:$0xff] (!%p191_p3), %vm267_vm0, %v665_v0  ;;  %597 = vmatprep.mubr.msk.f32.mxu0 (!%p191_p3), %vm666_vm1, %v665_v0  ;;  %v667_v4 = vmov (!%p191_p3), -inf   ;;  %v668_v8 = vmov (!%p191_p3), 0  }
   0x8   : > { %600 = vmatprep.subr.mxu1 (!%p191_p3), %v665_v0  ;;  %602 = vmatprep.mubr.msk.f32.mxu1 (!%p191_p3), %vm666_vm1, %v665_v0  ;;  %265 = vst.msk [vmem:[#allocation2] sm:$0xff] (!%p191_p3), %vm264_vm2, %v667_v4  ;;  %266 = vst.msk [vmem:[#allocation3] sm:$0xff] (!%p191_p3), %vm264_vm2, %v665_v0 }
   0x9   : > { %633 = vset.pattern.permute.xlu0 (!%p191_p3), %v668_v8  ;;  %634 = vset.pattern.permute.xlu1 (!%p191_p3), %v668_v8 }
   0xe   : > { %s755_s12 = smov (!%p232_p4, %s655_s12), 7  ;;  %v373_v27 = vld [vmem:[#allocation4] sm:$0xff] }
   0xf   : > { %s708_s16 = sshll.u32 %s755_s12, 3  ;;  %v349_v9 = vld [vmem:[#allocation2] sm:$0xff]  ;;  %v365_v21 = vld [vmem:[#allocation3] sm:$0xff] }
  0x10   : > { %s245_s19 = scalar_lea.vmem %s747_s1, %s708_s16  ;;  %s238_s22 = scalar_lea.vmem %s746_s0, %s708_s16 }
  0x11   : > { %v271_v1 = vld [vmem:[%s245_s19] sm:$0xff]  ;;  %s252_s25 = scalar_lea.vmem %s748_s2, %s708_s16  ;;  %s259_s28 = scalar_lea.vmem %s749_s3, %s708_s16 }
  0x12   : > { %v269_v2 = vld [vmem:[%s238_s22] sm:$0xff]  ;;  %596 = vmatpush3.xpose.msk.msra.mxu0 %vm267_vm0, %v271_v1 }
  0x13   : > { %v270_v3 = vmul.f32 0.35355338, %v269_v2  ;;  %v380_v13 = vld [vmem:[%s252_s25] sm:$0xff] }
  0x14   : > { %601 = vmatpush3.msra.mxu1 %v380_v13 }
  0x15   : > { %598 = vmatmul.mubr.msk.f32.vlgmr.msra.gmra.mrb[0].mxu0 %vm267_vm0, %v270_v3 }
  0xe8   : > { %v345_v5 = vpop.f32.mrb[0].mxu0 }
  0xe9   : > { %v599_v6 = vpop.f32.mrb[1].mxu0  ;;  %v350_v7 = vsel %vm267_vm0, %v345_v5, -inf }
  0xea   : > { %351 = vmax.xlane.f32.xlu0 %v350_v7 }
 0x177   : > { %v352_v10 = vpop.xlane.xlu0 %351 }
 0x178   : > { %v353_v11 = vmax.f32 %v349_v9, %v352_v10 }
 0x17a   : > { %v354_v12 = vsub.f32 %v349_v9, %v353_v11  ;;  %456 = vst.msk [vmem:[#allocation2] sm:$0xff] %vm264_vm2, %v353_v11  ;;  %359 = vperm.xlu0 %633, %v353_v11  }
 0x17c   : > { %v355_v19 = vmul.f32 1.442695, %v354_v12 }
 0x1f9   : > { %v360_v14 = vpop.permute.xlu0 %359 }
 0x1fa   : > { %v362_v15 = vsub.f32 %v345_v5, %v360_v14 }
 0x1fc   : > { %v363_v16 = vmul.f32 1.442695, %v362_v15 }
 0x1fe   : > { %635 = vpow2.f32 %v363_v16 }
 0x1ff   : > { %637 = vpow2.f32 %v355_v19 }
 0x208   : > { %v636_v17 = vpop.eup %635 }
 0x209   : > { %603 = vmatmul.mubr.msk.f32.vlgmr.msra.gmra.mrb[0].mxu1 %vm267_vm0, %v636_v17  ;;  %v367_v18 = vsel %vm267_vm0, %v636_v17, 0.0  ;;  %v638_v20 = vpop.eup %637 }
 0x20a   : > { %368 = vadd.xlane.f32.xlu1 %v367_v18  ;;  %v366_v22 = vmul.f32 %v638_v20, %v365_v21 }
 0x21b   : > { %376 = vperm.xlu1 %634, %v638_v20  }
 0x297   : > { %v369_v23 = vpop.xlane.xlu1 %368 }
 0x298   : > { %v370_v24 = vadd.f32 %v369_v23, %v366_v22 }
 0x29a   : > { %372 = vst.msk [vmem:[#allocation3] sm:$0xff] %vm264_vm2, %v370_v24 }
 0x29b   : > { %v377_v28 = vpop.permute.xlu1 %376 }
 0x29c   : > { %v379_v29 = vmul.f32 %v377_v28, %v373_v27 }
 0x2a1   : > { %v460_v25 = vld [vmem:[#allocation3] sm:$0xff] }
 0x2a2   : > { %639 = vrcp.f32 %v460_v25 }
 0x2ac   : > { %v640_v26 = vpop.eup %639 }
 0x2ad   : > { %465 = vperm.xlu1 %634, %v640_v26  }
 0x2dc   : > { %v450_v30 = vpop.f32.mrb[0].mxu1 }
 0x2dd   : > { %v454_v31 = vadd.f32 %v450_v30, %v379_v29  ;;  %v604_v32 = vpop.f32.mrb[1].mxu1 }
 0x2df   : > { %455 = vst.msk [vmem:[#allocation4] sm:$0xff] %vm267_vm0, %v454_v31 }
 0x2e6   : > { %v462_v33 = vld [vmem:[#allocation4] sm:$0xff] }
 0x32c   : > { %v466_v34 = vpop.permute.xlu1 %465 }
 0x32d   : > { %v468_v35 = vmul.f32 %v466_v34, %v462_v33 }
 0x32f   : > { %469 = vst.msk [vmem:[%s259_s28] sm:$0xff] %vm267_vm0, %v468_v35 }
 0x330 PF: > { %s13_s14 = sadd.s32 1, %s663_s14   ;;  %s750_s12 = smov %s659_s13 }
 0x331   : > { %p10_p5 = scmp.ge.s32.totalorder %s13_s14, 10   ;;  %s751_s13 = smov %s753_s15 }
 0x333   :  { %12 = sbr.rel (!%p10_p5) target bundleno = 2 (0x2), region = 76 }

// kernel: encoder_forward.6
= control target key start
LH: loop header
LB: loop body
LE: loop exit
PB: predicated region body
PF: predicated region fallthrough
CT: control target
= control target key end

     0   :  { %15 = vsyncpa [#allocation3], 0  ;;  %s1163_s0 = inlined_call_operand.vmem [shape: f32[16,32], index: 0, kind: input, shape index: {}]   ;;  %s1164_s1 = inlined_call_operand.vmem [shape: f32[32,32], index: 1, kind: input, shape index: {}]   ;;  %s1165_s2 = inlined_call_operand.vmem [shape: f32[1,32], index: 2, kind: input, shape index: {}]   ;;  %s1166_s3 = inlined_call_operand.vmem [shape: f32[32,32], index: 3, kind: input, shape index: {}]   ;;  %s1167_s4 = inlined_call_operand.hbm [shape: f32[1,32], index: 4, kind: input, shape index: {}]   ;;  %s1168_s5 = inlined_call_operand.vmem [shape: f32[32,32], index: 5, kind: input, shape index: {}]   ;;  %s1169_s6 = inlined_call_operand.hbm [shape: f32[1,32], index: 6, kind: input, shape index: {}]   ;;  %s1170_s7 = inlined_call_operand.vmem [shape: f32[16,32], index: 7, kind: output, shape index: {0}]   ;;  %s1171_s8 = inlined_call_operand.vmem [shape: f32[16,32], index: 8, kind: output, shape index: {1}]   ;;  %s1172_s9 = inlined_call_operand.vmem [shape: f32[16,32], index: 9, kind: output, shape index: {2}]  }
   0x1   :  { %16 = vsyncpa [#allocation5], 0  ;;  %s1009_s30 = smov 0  }
   0x2 LB: > { %s1015_s10 = sadd.s32 4294967295, %s952_s30   ;;  %p765_p0 = scmp.ge.s32.totalorder %s952_s30, 1  ;;  %s952_s30 = sphi %s1009_s30, %s22_s30  }
   0x3   : > { %p257_p1 = scmp.lt.s32.totalorder %s952_s30, 3  ;;  %p1173_p2 = scmp.eq.s32.totalorder %s1015_s10, 0 }
   0x4   : > { %s954_s12 = smov [#allocation2]   ;;  %s955_s14 = smov [#allocation4]  }
   0x5   : > { %p1020_p3 = pnand %p765_p0, %p257_p1  ;;  %s279_s13 = sshll.u32 %s954_s12, 4  ;;  %s280_s13 = int_to_ptr.vmem [resolvable:$true] %s279_s13 }
   0x6   : > { %s293_s15 = sshll.u32 %s955_s14, 4  ;;  %s882_s19 = scalar_lea.hbm %s1167_s4, 16  ;;  %s1032_s15 = int_to_ptr.vmem [resolvable:$true] %s293_s15 }
   0x7   : > { %s1175_s11 = scalar_select %p1020_p3, 1, 0 }
   0x8   : > { %p858_p4 = pneg %p1020_p3  ;;  %p883_p6 = scmp.ne.s32.totalorder %s1167_s4, %s882_s19 }
   0x9   : > { %p889_p10 = scmp.lt.u32.totalorder %s882_s19, %s1167_s4 }
   0xa   : > { %p1028_p5 = pnand %p1173_p2, %p858_p4 }
   0xc   : > { %p884_p7 = pneg %p1028_p5 }
   0xe   : > { %p885_p8 = pnand %p884_p7, %p883_p6 }
  0x10   : > { %p886_p9 = pneg %p885_p8 }
  0x12   : > { %p891_p11 = pnand %p889_p10, %p886_p9 }
  0x14   : > { %894 = shalt.err (!%p891_p11)
}
  0x15   : > { %s895_s24 = scalar_lea.vmem %s280_s13, 16  ;;  %s902_s25 = scalar_lea.vmem %s280_s13, 32 }
  0x16   : > { %p896_p12 = scmp.ne.s32.totalorder %s280_s13, %s895_s24  ;;  %p903_p1 = scmp.lt.s32.totalorder %s280_s13, %s280_s13 }
  0x17   : > { %p904_p4 = scmp.lt.s32.totalorder %s902_s25, %s895_s24 }
  0x18   : > { %p898_p13 = pnand %p896_p12, %p884_p7 }
  0x19   : > { %p905_p2 = por %p904_p4, %p903_p1 }
  0x1a   : > { %p899_p0 = pneg %p898_p13 }
  0x1c   : > { %p906_p3 = pnand %p905_p2, %p899_p0 }
  0x1e   : > { %909 = shalt.err (!%p906_p3)
}
  0x1f   : > { %861 = dma.hbm_to_vmem [thread:$0]  (!%p1028_p5), %s1167_s4, 16, %s280_s13, [#allocation3]  }
  0x20   : > { %s910_s12 = scalar_lea.hbm %s1169_s6, 16 }
  0x21   : > { %p911_p6 = scmp.ne.s32.totalorder %s1169_s6, %s910_s12  ;;  %p917_p3 = scmp.lt.u32.totalorder %s910_s12, %s1169_s6 }
  0x23   : > { %p913_p8 = pnand %p911_p6, %p884_p7 }
  0x25   : > { %p914_p2 = pneg %p913_p8 }
  0x27   : > { %p919_p9 = pnand %p917_p3, %p914_p2 }
  0x29   : > { %922 = shalt.err (!%p919_p9)
}
  0x2a   : > { %s923_s13 = scalar_lea.vmem %s1032_s15, 16  ;;  %s930_s20 = scalar_lea.vmem %s1032_s15, 32 }
  0x2b   : > { %p924_p10 = scmp.ne.s32.totalorder %s1032_s15, %s923_s13  ;;  %p931_p13 = scmp.lt.s32.totalorder %s1032_s15, %s1032_s15 }
  0x2c   : > { %p932_p0 = scmp.lt.s32.totalorder %s930_s20, %s923_s13 }
  0x2d   : > { %p926_p11 = pnand %p924_p10, %p884_p7 }
  0x2e   : > { %p933_p1 = por %p932_p0, %p931_p13 }
  0x2f   : > { %p927_p12 = pneg %p926_p11 }
  0x31   : > { %p934_p4 = pnand %p933_p1, %p927_p12 }
  0x33   : > { %937 = shalt.err (!%p934_p4)
}
  0x34   : > { %864 = dma.hbm_to_vmem [thread:$0]  (!%p1028_p5), %s1169_s6, 16, %s1032_s15, [#allocation5]  }
  0x35   : > { %p1177_p6 = scmp.ne.s32.totalorder %s1175_s11, 0 }
  0x36   : > { %p1178_p7 = scmp.eq.s32.totalorder (!%p1177_p6), %s1015_s10, 0 }
  0x37   : > { %313 = sbr.rel (%p1177_p6) target bundleno = 299 (0x12b), region = 48 }
  0x3e   : > { %943 = dma.done.wait (%p1178_p7), [#allocation3], 16   ;;  %p1179_p8 = pmov %p1178_p7 }
  0x3f   : > { %p1180_p2 = pmov %p1178_p7 }
  0x40   : > { %945 = vsyncadd (%p1179_p8), [#allocation3], 4294967280 }
  0x41   : > { %947 = dma.done.wait (%p1180_p2), [#allocation5], 16   ;;  %p1181_p3 = pmov %p1180_p2 }
  0x42   : > { %p359_p9 = scmp.lt.s32.totalorder %s1015_s10, 1  ;;  %v956_v0 = vmov 0.0|0.0   ;;  %vm957_vm0 = vmmov 0   ;;  %v958_v1 = vmov 0.0   ;;  %v376_v2 = vld [vmem:[%s1164_s1] sm:$0xff]  ;;  %v377_v3 = vld [vmem:[%s1164_s1 + $0x8] sm:$0xff] }
  0x43   : > { %949 = vsyncadd (%p1181_p3), [#allocation5], 4294967280  ;;  %832 = vmatprep.subr.bf16.mxu0 %v956_v0  ;;  %807 = vmatprep.mubr.msk.f32.mxu0 %vm957_vm0, %v958_v1  ;;  %v378_v4 = vld [vmem:[%s1164_s1 + $0x10] sm:$0xff]  ;;  %v833_v5 = vpack.c.bf16 %v377_v3, %v376_v2  ;;  %v379_v6 = vld [vmem:[%s1164_s1 + $0x18] sm:$0xff]  ;;  %vm387_vm1 = vcmask 261120  }
  0x44   : > { %838 = vmatprep.subr.bf16.mxu1 %v956_v0  ;;  %818 = vmatprep.mubr.msk.f32.mxu1 %vm957_vm0, %v958_v1  ;;  %s1183_s10 = smov (!%p359_p9, %s1015_s10), 1  ;;  %v462_v7 = vld [vmem:[%s1166_s3] sm:$0xff]  ;;  %v463_v8 = vld [vmem:[%s1166_s3 + $0x8] sm:$0xff]  ;;  %v836_v9 = vpack.c.bf16 %v379_v6, %v378_v4  ;;  %v464_v11 = vld [vmem:[%s1166_s3 + $0x10] sm:$0xff] }
  0x45   : > { %s1108_s28 = sshll.u32 %s1183_s10, 3  ;;  %834 = vmatpush3.bf16.msra.mxu0 %v833_v5  ;;  %v839_v10 = vpack.c.bf16 %v463_v8, %v462_v7  ;;  %v465_v12 = vld [vmem:[%s1166_s3 + $0x18] sm:$0xff]  ;;  %v544_v13 = vld [vmem:[%s1168_s5] sm:$0xff]  ;;  %v545_v14 = vld [vmem:[%s1168_s5 + $0x8] sm:$0xff] }
  0x46   : > { %835 = vmatprep.subr.bf16.mxu0 %v956_v0  ;;  %s362_s22 = scalar_lea.vmem %s1163_s0, %s1108_s28  ;;  %v842_v15 = vpack.c.bf16 %v465_v12, %v464_v11  ;;  %v845_v17 = vpack.c.bf16 %v545_v14, %v544_v13  ;;  %v546_v18 = vld [vmem:[%s1168_s5 + $0x10] sm:$0xff]  ;;  %v547_v19 = vld [vmem:[%s1168_s5 + $0x18] sm:$0xff]  ;;  %v776_v21 = vld [vmem:[%s1165_s2] ss:$0 sm:$0xff]  ;;  %s366_s18 = scalar_lea.vmem %s1170_s7, %s1108_s28 }
  0x47   : > { %840 = vmatpush3.bf16.msra.mxu1 %v839_v10  ;;  %v375_v16 = vld [vmem:[%s362_s22] sm:$0xff]  ;;  %v848_v20 = vpack.c.bf16 %v547_v19, %v546_v18  ;;  %s370_s20 = scalar_lea.vmem %s1171_s8, %s1108_s28  ;;  %s374_s22 = scalar_lea.vmem %s1172_s9, %s1108_s28 }
  0x48   : > { %841 = vmatprep.subr.bf16.mxu1 %v956_v0  ;;  %v778_v23 = vld [vmem:[#allocation2] ss:$0 sm:$0xff]  ;;  %v780_v29 = vld [vmem:[#allocation4] ss:$0 sm:$0xff] }
  0x49   : > { %837 = vmatpush3.bf16.msra.mxu0 %v836_v9 }
  0x4a   : > { %844 = vmatprep.subr.bf16.mxu0 %v956_v0 }
  0x4b   : > { %843 = vmatpush3.bf16.msra.mxu1 %v842_v15 }
  0x4c   : > { %808 = vmatmul.mubr.msk.f32.vlgmr.msra.gmra.mrb[0].mxu0 %vm387_vm1, %v375_v16 }
  0x4d   : > { %846 = vmatpush3.bf16.msra.mxu0 %v845_v17  ;;  %829 = vmatprep.mubr.msk.f32.mxu0 %vm957_vm0, %v958_v1 }
  0x4e   : > { %847 = vmatprep.subr.bf16.mxu0 %v956_v0  ;;  %819 = vmatmul.mubr.msk.f32.vlgmr.msra.gmra.mrb[0].mxu1 %vm387_vm1, %v375_v16 }
  0x51   : > { %849 = vmatpush3.bf16.msra.mxu0 %v848_v20 }
  0x54   : > { %830 = vmatmul.mubr.msk.f32.vlgmr.msra.gmra.mrb[2].mxu0 %vm387_vm1, %v375_v16 }
 0x11f   : > { %v457_v22 = vpop.f32.mrb[0].mxu0 }
 0x120   : > { %v458_v24 = vadd.f32 %v776_v21, %v457_v22  ;;  %v809_v25 = vpop.f32.mrb[1].mxu0 }
 0x121   : > { %v539_v26 = vpop.f32.mrb[0].mxu1 }
 0x122   : > { %461 = vst.msk [vmem:[%s366_s18] sm:$0xff] %vm387_vm1, %v458_v24  ;;  %v540_v27 = vadd.f32 %v778_v23, %v539_v26  ;;  %v820_v28 = vpop.f32.mrb[1].mxu1 }
 0x124   : > { %543 = vst.msk [vmem:[%s370_s20] sm:$0xff] %vm387_vm1, %v540_v27 }
 0x127   : > { %v621_v30 = vpop.f32.mrb[2].mxu0 }
 0x128   : > { %v622_v31 = vadd.f32 %v780_v29, %v621_v30  ;;  %v831_v32 = vpop.f32.mrb[3].mxu0 }
 0x12a   : > { %625 = vst.msk [vmem:[%s374_s22] sm:$0xff] %vm387_vm1, %v622_v31 }
 0x12b PF: > { %s22_s30 = sadd.s32 1, %s952_s30  }
 0x12c   : > { %p19_p5 = scmp.ge.s32.totalorder %s22_s30, 4  }
 0x12e   :  { %21 = sbr.rel (!%p19_p5) target bundleno = 2 (0x2), region = 111 }
 0x135   :  { %673 = vsyncpa [#allocation3], 1 }
 0x136   :  { %675 = vsyncpa [#allocation3 + $0x1], 1 }
 0x137   :  { %676 = vsyncpa [#allocation5], 1 }

// kernel: encoder_forward.8
= control target key start
LH: loop header
LB: loop body
LE: loop exit
PB: predicated region body
PF: predicated region fallthrough
CT: control target
= control target key end

     0   :  { %s1178_s21 = smov 0   ;;  %s1180_s22 = smov 0   ;;  %s1298_s0 = inlined_call_operand.vmem [shape: f32[16,32], index: 0, kind: input, shape index: {}]   ;;  %s1299_s1 = inlined_call_operand.vmem [shape: f32[16,32], index: 1, kind: input, shape index: {}]   ;;  %s1300_s2 = inlined_call_operand.vmem [shape: f32[32,32], index: 2, kind: input, shape index: {}]   ;;  %s1301_s3 = inlined_call_operand.vmem [shape: f32[1,32], index: 3, kind: input, shape index: {}]   ;;  %s1302_s4 = inlined_call_operand.vmem [shape: f32[1,32], index: 4, kind: input, shape index: {}]   ;;  %s1303_s5 = inlined_call_operand.vmem [shape: f32[1,32], index: 5, kind: input, shape index: {}]   ;;  %s1304_s6 = inlined_call_operand.vmem [shape: f32[32,64], index: 6, kind: input, shape index: {}]   ;;  %s1305_s7 = inlined_call_operand.vmem [shape: f32[1,64], index: 7, kind: input, shape index: {}]   ;;  %s1306_s8 = inlined_call_operand.vmem [shape: f32[64,32], index: 8, kind: input, shape index: {}]   ;;  %s1307_s9 = inlined_call_operand.vmem [shape: f32[1,32], index: 9, kind: input, shape index: {}]   ;;  %s1308_s10 = inlined_call_operand.vmem [shape: f32[1,32], index: 10, kind: input, shape index: {}]   ;;  %s1309_s11 = inlined_call_operand.vmem [shape: f32[1,32], index: 11, kind: input, shape index: {}]   ;;  %s1310_s12 = inlined_call_operand.vmem [shape: f32[16,32], index: 12, kind: output, shape index: {}]  }
   0x1   :  { %s1182_s23 = smov 0  }
   0x2 LB: > { %s34_s24 = sadd.s32 1, %s1104_s22  ;;  %p955_p0 = scmp.ge.s32.totalorder %s1108_s23, 1  ;;  %s1108_s23 = sphi %s1182_s23, %s22_s23   ;;  %s1104_s22 = sphi %s1180_s22, %s1312_s22   ;;  %s1100_s21 = sphi %s1178_s21, %s1311_s21  }
   0x3   : > { %p36_p1 = scmp.ge.s32.totalorder %s34_s24, 2  ;;  %p410_p2 = scmp.lt.s32.totalorder %s1108_s23, 3 }
   0x5   : > { %s1314_s24 = smov (%p36_p1, %s34_s24), 0  ;;  %p411_p3 = pnand %p955_p0, %p410_p2 }
   0x6   : > { %v496_v0 = vld [vmem:[%s1300_s2] sm:$0xff] (!%p411_p3)  ;;  %v497_v1 = vld [vmem:[%s1300_s2 + $0x8] sm:$0xff] (!%p411_p3)  ;;  %v498_v2 = vld [vmem:[%s1300_s2 + $0x10] sm:$0xff] (!%p411_p3)  ;;  %v1110_v3 = vmov (!%p411_p3), 0.0|0.0   ;;  %vm507_vm0 = vcmask (!%p411_p3), 261120   ;;  %p466_p4 = scmp.lt.s32.totalorder (!%p411_p3), %s1100_s21, 1 }
   0x7   : > { %414 = sbr.rel (%p411_p3) target bundleno = 1311 (0x51f), region = 68  ;;  %1031 = vmatprep.subr.bf16.mxu1 (!%p411_p3), %v1110_v3  ;;  %v1032_v4 = vpack.c.bf16 (!%p411_p3), %v497_v1, %v496_v0  ;;  %v499_v5 = vld [vmem:[%s1300_s2 + $0x18] sm:$0xff] (!%p411_p3)  ;;  %1043 = vmatprep.subr.bf16.mxu0 (!%p411_p3), %v1110_v3  ;;  %vm1111_vm1 = vmmov (!%p411_p3), 0   ;;  %v1112_v6 = vmov (!%p411_p3), 0.0   ;;  %v959_v9 = vld [vmem:[%s1301_s3] ss:$0 sm:$0xff] (!%p411_p3) }
   0x8   : > { %998 = vmatprep.mubr.msk.f32.mxu1 (!%p411_p3), %vm1111_vm1, %v1112_v6  ;;  %614 = vst.msk [vmem:[#allocation3] sm:$0xff] (!%p411_p3), %vm507_vm0, %v1112_v6  ;;  %1028 = vmatprep.mubr.msk.f32.mxu0 (!%p411_p3), %vm1111_vm1, %v1112_v6  ;;  %v1035_v7 = vpack.c.bf16 (!%p411_p3), %v499_v5, %v498_v2  ;;  %v616_v21 = vld [vmem:[%s1304_s6] sm:$0xff] (!%p411_p3)  ;;  %v617_v22 = vld [vmem:[%s1304_s6 + $0x8] sm:$0xff] (!%p411_p3)  ;;  %v618_v24 = vld [vmem:[%s1304_s6 + $0x10] sm:$0xff] (!%p411_p3)  ;;  %vm711_vm2 = vcmask (!%p411_p3), 523264  }
   0x9   : > { %1033 = vmatpush3.bf16.msra.mxu1 (!%p411_p3), %v1032_v4  ;;  %v1038_v23 = vpack.c.bf16 (!%p411_p3), %v617_v22, %v616_v21  ;;  %v619_v25 = vld [vmem:[%s1304_s6 + $0x18] sm:$0xff] (!%p411_p3)  ;;  %v703_v27 = vld [vmem:[%s1306_s8] sm:$0xff] (!%p411_p3)  ;;  %v704_v28 = vld [vmem:[%s1306_s8 + $0x8] sm:$0xff] (!%p411_p3) }
   0xa   : > { %1034 = vmatprep.subr.bf16.mxu1 (!%p411_p3), %v1110_v3  ;;  %v1041_v26 = vpack.c.bf16 (!%p411_p3), %v619_v25, %v618_v24  ;;  %v705_v29 = vld [vmem:[%s1306_s8 + $0x10] sm:$0xff] (!%p411_p3)  ;;  %v1044_v30 = vpack.c.bf16 (!%p411_p3), %v704_v28, %v703_v27  ;;  %v706_v31 = vld [vmem:[%s1306_s8 + $0x18] sm:$0xff] (!%p411_p3)  ;;  %v707_v33 = vld [vmem:[%s1306_s8 + $0x20] sm:$0xff] (!%p411_p3) }
   0xb   : > { %v1047_v32 = vpack.c.bf16 (!%p411_p3), %v706_v31, %v705_v29  ;;  %v708_v34 = vld [vmem:[%s1306_s8 + $0x28] sm:$0xff] (!%p411_p3)  ;;  %v961_v40 = vld [vmem:[%s1302_s4] ss:$0 sm:$0xff] (!%p411_p3)  ;;  %v709_v46 = vld [vmem:[%s1306_s8 + $0x30] sm:$0xff] (!%p411_p3) }
   0xc   : > { %1045 = vmatpush3.bf16.msra.mxu0 (!%p411_p3), %v1044_v30  ;;  %v1050_v35 = vpack.c.bf16 (!%p411_p3), %v708_v34, %v707_v33  ;;  %v962_v42 = vld [vmem:[%s1303_s5] ss:$0 sm:$0xff] (!%p411_p3)  ;;  %v710_v47 = vld [vmem:[%s1306_s8 + $0x38] sm:$0xff] (!%p411_p3) }
   0xd   : > { %1036 = vmatpush3.bf16.msra.mxu1 (!%p411_p3), %v1035_v7  ;;  %1046 = vmatprep.subr.bf16.mxu0 (!%p411_p3), %v1110_v3  ;;  %v1053_v48 = vpack.c.bf16 (!%p411_p3), %v710_v47, %v709_v46  ;;  %v963_v49 = vld [vmem:[%s1305_s7] ss:$0 sm:$0xff] (!%p411_p3) }
   0xe   : > { %s1316_s21 = smov (!%p466_p4, %s1100_s21), 1  ;;  %1037 = vmatprep.subr.bf16.mxu1 %v1110_v3  ;;  %v966_v58 = vld [vmem:[%s1307_s9] ss:$0 sm:$0xff] }
   0xf   : > { %s1209_s15 = sshll.u32 %s1316_s21, 3  ;;  %v702_v54 = vld [vmem:[#allocation3] sm:$0xff] }
  0x10   : > { %s469_s18 = scalar_lea.vmem %s1298_s0, %s1209_s15  ;;  %s473_s25 = scalar_lea.vmem %s1299_s1, %s1209_s15  ;;  %1048 = vmatpush3.bf16.msra.mxu0 %v1047_v32 }
  0x11   : > { %v495_v8 = vld [vmem:[%s469_s18] sm:$0xff]  ;;  %1049 = vmatprep.subr.bf16.mxu0 %v1110_v3  ;;  %s490_s20 = scalar_lea.vmem %s1310_s12, %s1209_s15 }
  0x12   : > { %999 = vmatmul.mubr.msk.f32.vlgmr.msra.gmra.mrb[0].mxu1 %vm507_vm0, %v495_v8  ;;  %v581_v11 = vld [vmem:[%s473_s25] sm:$0xff] }
  0x13   : > { %1009 = vmatprep.mubr.msk.f32.mxu1 %vm1111_vm1, %v1112_v6  ;;  %1039 = vmatpush3.bf16.msra.mxu1 %v1038_v23  ;;  %v967_v8 = vld [vmem:[%s1308_s10] ss:$0 sm:$0xff] }
  0x14   : > { %1040 = vmatprep.subr.bf16.mxu1 %v1110_v3  ;;  %1051 = vmatpush3.bf16.msra.mxu0 %v1050_v35 }
  0x15   : > { %1052 = vmatprep.subr.bf16.mxu0 %v1110_v3 }
  0x17   : > { %1042 = vmatpush3.bf16.msra.mxu1 %v1041_v26 }
  0x18   : > { %1054 = vmatpush3.bf16.msra.mxu0 %v1053_v48 }
  0xe5   : > { %v577_v10 = vpop.f32.mrb[0].mxu1 }
  0xe6   : > { %v578_v12 = vadd.f32 %v959_v9, %v577_v10  ;;  %v1000_v13 = vpop.f32.mrb[1].mxu1  ;;  %v968_v10 = vld [vmem:[%s1309_s11] ss:$0 sm:$0xff] }
  0xe8   : > { %v582_v14 = vadd.f32 %v581_v11, %v578_v12 }
  0xea   : > { %v583_v15 = vsel %vm507_vm0, %v582_v14, 0.0 }
  0xeb   : > { %584 = vadd.xlane.f32.xlu0 %v583_v15 }
 0x178   : > { %v585_v16 = vpop.xlane.xlu0 %584 }
 0x179   : > { %v587_v17 = vmul.f32 0.03125, %v585_v16 }
 0x17b   : > { %v588_v18 = vsub.f32 %v582_v14, %v587_v17 }
 0x17d   : > { %v589_v19 = vmul.f32 %v588_v18, %v588_v18 }
 0x17f   : > { %v590_v20 = vsel %vm507_vm0, %v589_v19, 0.0 }
 0x180   : > { %591 = vadd.xlane.f32.xlu0 %v590_v20 }
 0x20d   : > { %v592_v36 = vpop.xlane.xlu0 %591 }
 0x20e   : > { %v593_v37 = vmul.f32 0.03125, %v592_v36 }
 0x210   : > { %v594_v38 = vadd.f32 1e-05, %v593_v37 }
 0x212   : > { %1082 = vrsqrt.f32 %v594_v38 }
 0x21c   : > { %v1083_v39 = vpop.eup %1082 }
 0x21d   : > { %v596_v41 = vmul.f32 %v1083_v39, %v588_v18 }
 0x21f   : > { %v604_v43 = vmul.f32 %v961_v40, %v596_v41 }
 0x221   : > { %v612_v44 = vadd.f32 %v962_v42, %v604_v43 }
 0x223   : > { %613 = vst.msk [vmem:[#allocation2] sm:$0xff] %vm507_vm0, %v612_v44 }
 0x22a   : > { %v615_v45 = vld [vmem:[#allocation2] sm:$0xff] }
 0x22b   : > { %1010 = vmatmul.mubr.msk.f32.vlgmr.msra.gmra.mrb[2].mxu1 %vm507_vm0, %v615_v45 }
 0x2fe   : > { %v697_v50 = vpop.f32.mrb[2].mxu1 }
 0x2ff   : > { %v698_v51 = vadd.f32 %v963_v49, %v697_v50  ;;  %v1011_v52 = vpop.f32.mrb[3].mxu1 }
 0x301   : > { %v701_v53 = vmax.f32 %v698_v51, 0.0 }
 0x303   : > { %1029 = vmatmul.mubr.msk.f32.vlgmr.msra.gmra.mrb[0].mxu0 %vm711_vm2, %v701_v53 }
 0x3d6   : > { %v781_v55 = vpop.f32.mrb[0].mxu0 }
 0x3d7   : > { %v785_v56 = vadd.f32 %v781_v55, %v702_v54  ;;  %v1030_v57 = vpop.f32.mrb[1].mxu0 }
 0x3d9   : > { %786 = vst.msk [vmem:[#allocation3] sm:$0xff] %vm507_vm0, %v785_v56 }
 0x3e0   : > { %v790_v59 = vld [vmem:[#allocation3] sm:$0xff] }
 0x3e1   : > { %v798_v60 = vadd.f32 %v966_v58, %v790_v59 }
 0x3e3   : > { %v800_v61 = vadd.f32 %v798_v60, %v615_v45 }
 0x3e5   : > { %v801_v62 = vsel %vm507_vm0, %v800_v61, 0.0 }
 0x3e6   : > { %802 = vadd.xlane.f32.xlu1 %v801_v62 }
 0x473   : > { %v803_v63 = vpop.xlane.xlu1 %802 }
 0x474   : > { %v805_v0 = vmul.f32 0.03125, %v803_v63 }
 0x476   : > { %v806_v1 = vsub.f32 %v800_v61, %v805_v0 }
 0x478   : > { %v807_v2 = vmul.f32 %v806_v1, %v806_v1 }
 0x47a   : > { %v808_v3 = vsel %vm507_vm0, %v807_v2, 0.0 }
 0x47b   : > { %809 = vadd.xlane.f32.xlu1 %v808_v3 }
 0x508   : > { %v810_v4 = vpop.xlane.xlu1 %809 }
 0x509   : > { %v811_v5 = vmul.f32 0.03125, %v810_v4 }
 0x50b   : > { %v812_v6 = vadd.f32 1e-05, %v811_v5 }
 0x50d   : > { %1084 = vrsqrt.f32 %v812_v6 }
 0x517   : > { %v1085_v7 = vpop.eup %1084 }
 0x518   : > { %v814_v9 = vmul.f32 %v1085_v7, %v806_v1 }
 0x51a   : > { %v822_v11 = vmul.f32 %v967_v8, %v814_v9 }
 0x51c   : > { %v830_v12 = vadd.f32 %v968_v10, %v822_v11 }
 0x51e   : > { %831 = vst.msk [vmem:[%s490_s20] sm:$0xff] %vm507_vm0, %v830_v12 }
 0x51f PF: > { %s22_s23 = sadd.s32 1, %s1108_s23   ;;  %s1311_s21 = smov %s1104_s22 }
 0x520   : > { %p19_p5 = scmp.ge.s32.totalorder %s22_s23, 4   ;;  %s1312_s22 = smov %s1314_s24 }
 0x522   :  { %21 = sbr.rel (!%p19_p5) target bundleno = 2 (0x2), region = 118 }

// kernel: encoder_forward.9
= control target key start
LH: loop header
LB: loop body
LE: loop exit
PB: predicated region body
PF: predicated region fallthrough
CT: control target
= control target key end

     0   :  { %s870_s30 = smov 0   ;;  %s953_s0 = inlined_call_operand.vmem [shape: f32[16,32], index: 0, kind: input, shape index: {}]   ;;  %s954_s1 = inlined_call_operand.vmem [shape: f32[32,32], index: 1, kind: input, shape index: {}]   ;;  %s955_s2 = inlined_call_operand.vmem [shape: f32[1,32], index: 2, kind: input, shape index: {}]   ;;  %s956_s3 = inlined_call_operand.vmem [shape: f32[32,32], index: 3, kind: input, shape index: {}]   ;;  %s957_s4 = inlined_call_operand.vmem [shape: f32[1,32], index: 4, kind: input, shape index: {}]   ;;  %s958_s5 = inlined_call_operand.vmem [shape: f32[32,32], index: 5, kind: input, shape index: {}]   ;;  %s959_s6 = inlined_call_operand.vmem [shape: f32[1,32], index: 6, kind: input, shape index: {}]   ;;  %s960_s7 = inlined_call_operand.vmem [shape: f32[16,32], index: 7, kind: output, shape index: {0}]   ;;  %s961_s8 = inlined_call_operand.vmem [shape: f32[16,32], index: 8, kind: output, shape index: {1}]   ;;  %s962_s9 = inlined_call_operand.vmem [shape: f32[16,32], index: 9, kind: output, shape index: {2}]  }
   0x1 LB: > { %s715_s10 = sadd.s32 4294967295, %s815_s30   ;;  %p719_p0 = scmp.ge.s32.totalorder %s815_s30, 1  ;;  %s815_s30 = sphi %s870_s30, %s20_s30  }
   0x2   : > { %p291_p1 = scmp.lt.s32.totalorder %s815_s30, 3 }
   0x4   : > { %p292_p2 = pnand %p719_p0, %p291_p1 }
   0x5   : > { %v350_v0 = vld [vmem:[%s954_s1] sm:$0xff] (!%p292_p2)  ;;  %v351_v1 = vld [vmem:[%s954_s1 + $0x8] sm:$0xff] (!%p292_p2)  ;;  %v352_v2 = vld [vmem:[%s954_s1 + $0x10] sm:$0xff] (!%p292_p2)  ;;  %v817_v3 = vmov (!%p292_p2), 0.0|0.0   ;;  %vm818_vm0 = vmmov (!%p292_p2), 0   ;;  %v819_v6 = vmov (!%p292_p2), 0.0  }
   0x6   : > { %295 = sbr.rel (%p292_p2) target bundleno = 240 (0xf0), region = 48  ;;  %780 = vmatprep.subr.bf16.mxu0 (!%p292_p2), %v817_v3  ;;  %v781_v4 = vpack.c.bf16 (!%p292_p2), %v351_v1, %v350_v0  ;;  %v353_v5 = vld [vmem:[%s954_s1 + $0x18] sm:$0xff] (!%p292_p2)  ;;  %755 = vmatprep.mubr.msk.f32.mxu0 (!%p292_p2), %vm818_vm0, %v819_v6  ;;  %p333_p3 = scmp.lt.s32.totalorder (!%p292_p2), %s715_s10, 1  ;;  %v436_v7 = vld [vmem:[%s956_s3] sm:$0xff] (!%p292_p2)  ;;  %v437_v8 = vld [vmem:[%s956_s3 + $0x8] sm:$0xff] (!%p292_p2)  ;;  %vm361_vm1 = vcmask (!%p292_p2), 261120  }
   0x7   : > { %786 = vmatprep.subr.bf16.mxu1 (!%p292_p2), %v817_v3  ;;  %v787_v9 = vpack.c.bf16 (!%p292_p2), %v437_v8, %v436_v7  ;;  %v438_v10 = vld [vmem:[%s956_s3 + $0x10] sm:$0xff] (!%p292_p2)  ;;  %766 = vmatprep.mubr.msk.f32.mxu1 (!%p292_p2), %vm818_vm0, %v819_v6  ;;  %v784_v11 = vpack.c.bf16 (!%p292_p2), %v353_v5, %v352_v2  ;;  %v439_v12 = vld [vmem:[%s956_s3 + $0x18] sm:$0xff] (!%p292_p2)  ;;  %v518_v13 = vld [vmem:[%s958_s5] sm:$0xff] (!%p292_p2) }
   0x8   : > { %782 = vmatpush3.bf16.msra.mxu0 (!%p292_p2), %v781_v4  ;;  %v519_v14 = vld [vmem:[%s958_s5 + $0x8] sm:$0xff] (!%p292_p2)  ;;  %v790_v15 = vpack.c.bf16 (!%p292_p2), %v439_v12, %v438_v10  ;;  %v520_v18 = vld [vmem:[%s958_s5 + $0x10] sm:$0xff] (!%p292_p2)  ;;  %v521_v19 = vld [vmem:[%s958_s5 + $0x18] sm:$0xff] (!%p292_p2) }
   0x9   : > { %783 = vmatprep.subr.bf16.mxu0 (!%p292_p2), %v817_v3  ;;  %788 = vmatpush3.bf16.msra.mxu1 (!%p292_p2), %v787_v9  ;;  %v793_v17 = vpack.c.bf16 (!%p292_p2), %v519_v14, %v518_v13  ;;  %v796_v20 = vpack.c.bf16 (!%p292_p2), %v521_v19, %v520_v18  ;;  %v724_v21 = vld [vmem:[%s955_s2] ss:$0 sm:$0xff] (!%p292_p2) }
   0xa   : > { %789 = vmatprep.subr.bf16.mxu1 (!%p292_p2), %v817_v3  ;;  %v726_v22 = vld [vmem:[%s957_s4] ss:$0 sm:$0xff] (!%p292_p2) }
   0xb   : > { %v728_v29 = vld [vmem:[%s959_s6] ss:$0 sm:$0xff] (!%p292_p2) }
   0xc   : > { %785 = vmatpush3.bf16.msra.mxu0 (!%p292_p2), %v784_v11 }
   0xd   : > { %s964_s10 = smov (!%p333_p3, %s715_s10), 1  ;;  %792 = vmatprep.subr.bf16.mxu0 %v817_v3  ;;  %791 = vmatpush3.bf16.msra.mxu1 %v790_v15 }
   0xe   : > { %s910_s12 = sshll.u32 %s964_s10, 3 }
   0xf   : > { %s336_s15 = scalar_lea.vmem %s953_s0, %s910_s12  ;;  %s340_s25 = scalar_lea.vmem %s960_s7, %s910_s12 }
  0x10   : > { %v349_v16 = vld [vmem:[%s336_s15] sm:$0xff]  ;;  %s344_s28 = scalar_lea.vmem %s961_s8, %s910_s12  ;;  %s348_s15 = scalar_lea.vmem %s962_s9, %s910_s12 }
  0x11   : > { %756 = vmatmul.mubr.msk.f32.vlgmr.msra.gmra.mrb[0].mxu0 %vm361_vm1, %v349_v16  ;;  %767 = vmatmul.mubr.msk.f32.vlgmr.msra.gmra.mrb[0].mxu1 %vm361_vm1, %v349_v16 }
  0x12   : > { %794 = vmatpush3.bf16.msra.mxu0 %v793_v17  ;;  %777 = vmatprep.mubr.msk.f32.mxu0 %vm818_vm0, %v819_v6 }
  0x13   : > { %795 = vmatprep.subr.bf16.mxu0 %v817_v3 }
  0x16   : > { %797 = vmatpush3.bf16.msra.mxu0 %v796_v20 }
  0x19   : > { %778 = vmatmul.mubr.msk.f32.vlgmr.msra.gmra.mrb[2].mxu0 %vm361_vm1, %v349_v16 }
  0xe4   : > { %v431_v23 = vpop.f32.mrb[0].mxu0  ;;  %v513_v26 = vpop.f32.mrb[0].mxu1 }
  0xe5   : > { %v432_v24 = vadd.f32 %v724_v21, %v431_v23  ;;  %v757_v25 = vpop.f32.mrb[1].mxu0  ;;  %v514_v27 = vadd.f32 %v726_v22, %v513_v26  ;;  %v768_v28 = vpop.f32.mrb[1].mxu1 }
  0xe7   : > { %435 = vst.msk [vmem:[%s340_s25] sm:$0xff] %vm361_vm1, %v432_v24  ;;  %517 = vst.msk [vmem:[%s344_s28] sm:$0xff] %vm361_vm1, %v514_v27 }
  0xec   : > { %v595_v30 = vpop.f32.mrb[2].mxu0 }
  0xed   : > { %v596_v31 = vadd.f32 %v728_v29, %v595_v30  ;;  %v779_v32 = vpop.f32.mrb[3].mxu0 }
  0xef   : > { %599 = vst.msk [vmem:[%s348_s15] sm:$0xff] %vm361_vm1, %v596_v31 }
  0xf0 PF: > { %s20_s30 = sadd.s32 1, %s815_s30  }
  0xf1   : > { %p17_p4 = scmp.ge.s32.totalorder %s20_s30, 4  }
  0xf3   :  { %19 = sbr.rel (!%p17_p4) target bundleno = 1 (0x1), region = 102 }

// kernel: encoder_forward.11
= control target key start
LH: loop header
LB: loop body
LE: loop exit
PB: predicated region body
PF: predicated region fallthrough
CT: control target
= control target key end

     0   :  { %s1481_s0 = inlined_call_operand.vmem [shape: f32[16,32], index: 0, kind: input, shape index: {}]   ;;  %s1482_s1 = inlined_call_operand.vmem [shape: f32[16,32], index: 1, kind: input, shape index: {}]   ;;  %s1483_s2 = inlined_call_operand.vmem [shape: f32[32,32], index: 2, kind: input, shape index: {}]   ;;  %s1484_s3 = inlined_call_operand.vmem [shape: f32[1,32], index: 3, kind: input, shape index: {}]   ;;  %s1485_s4 = inlined_call_operand.vmem [shape: f32[1,32], index: 4, kind: input, shape index: {}]   ;;  %s1486_s5 = inlined_call_operand.vmem [shape: f32[1,32], index: 5, kind: input, shape index: {}]   ;;  %s1487_s6 = inlined_call_operand.vmem [shape: f32[32,64], index: 6, kind: input, shape index: {}]   ;;  %s1488_s7 = inlined_call_operand.vmem [shape: f32[1,64], index: 7, kind: input, shape index: {}]   ;;  %s1489_s8 = inlined_call_operand.vmem [shape: f32[64,32], index: 8, kind: input, shape index: {}]   ;;  %s1490_s9 = inlined_call_operand.vmem [shape: f32[1,32], index: 9, kind: input, shape index: {}]   ;;  %s1491_s10 = inlined_call_operand.vmem [shape: f32[1,32], index: 10, kind: input, shape index: {}]   ;;  %s1492_s11 = inlined_call_operand.vmem [shape: f32[1,32], index: 11, kind: input, shape index: {}]   ;;  %s1493_s12 = inlined_call_operand.hbm [shape: f32[16,32], index: 12, kind: output, shape index: {}]  }
   0x1   :  { %1495 = sst [smem:[#allocation8_spill]] %s1481_s0 }
   0x2   :  { %1496 = sst [smem:[#allocation9_spill]] %s1482_s1 }
   0x3   :  { %1497 = sst [smem:[#allocation10_spill]] %s1483_s2 }
   0x4   :  { %17 = vsyncpa [#allocation5], 0 }
   0x5   :  { %19 = vsyncpa [#allocation5 + $0x1], 0  ;;  %s1287_s21 = smov 0   ;;  %s1289_s22 = smov 0  }
   0x6   :  { %s1291_s23 = smov 0   ;;  %s1293_s24 = smov 0  }
   0x7   :  { %s1295_s25 = smov 0   ;;  %s1297_s26 = smov 0  }
   0x8 LB: > { %s967_s27 = sadd.s32 4294967295, %s1216_s26   ;;  %s968_s28 = sadd.s32 4294967294, %s1216_s26   ;;  %s1216_s26 = sphi %s1297_s26, %s25_s26   ;;  %s1212_s25 = sphi %s1295_s25, %s1509_s25   ;;  %s1208_s24 = sphi %s1293_s24, %s1508_s24   ;;  %s1204_s23 = sphi %s1291_s23, %s1507_s23   ;;  %s1200_s22 = sphi %s1289_s22, %s1506_s22   ;;  %s1196_s21 = sphi %s1287_s21, %s1505_s21  }
   0x9   : > { %s37_s29 = sadd.s32 1, %s1212_s25  ;;  %s321_s30 = sadd.s32 1, %s1204_s23 }
   0xa   : > { %p39_p0 = scmp.ge.s32.totalorder %s37_s29, 2  ;;  %p331_p1 = scmp.ne.s32.totalorder %s1204_s23, %s1200_s22 }
   0xb   : > { %p332_p2 = scmp.eq.s32.totalorder %s967_s27, 1  ;;  %p337_p3 = scmp.ne.s32.totalorder %s1200_s22, %s1196_s21 }
   0xc   : > { %s1511_s29 = smov (%p39_p0, %s37_s29), 0  ;;  %p338_p5 = scmp.eq.s32.totalorder %s968_s28, 1 }
   0xd   : > { %1498 = sst [smem:[#allocation7_spill]] %s1511_s29  ;;  %p1327_p4 = por %p332_p2, %p331_p1 }
   0xe   : > { %s318_s14 = ssub.s32 %s1212_s25, %s1511_s29  ;;  %p974_p6 = scmp.ge.s32.totalorder %s1216_s26, 1 }
   0xf   : > { %p319_p7 = scmp.eq.s32.totalorder %s318_s14, 0  ;;  %p1334_p8 = por %p338_p5, %p337_p3 }
  0x10   : > { %p413_p9 = scmp.lt.s32.totalorder %s1216_s26, 3 }
  0x11   : > { %s1340_s16 = scalar_select %p319_p7, %s1204_s23, %s321_s30  }
  0x12   : > { %p414_p10 = pnand %p974_p6, %p413_p9 }
  0x13   : > { %s1501_s2 = sld [smem:[#allocation10_spill]] (!%p414_p10)  ;;  %v1218_v3 = vmov (!%p414_p10), 0.0|0.0   ;;  %vm507_vm0 = vcmask (!%p414_p10), 261120   ;;  %p470_p11 = scmp.lt.s32.totalorder (!%p414_p10), %s1208_s24, 1  ;;  %vm1219_vm1 = vmmov (!%p414_p10), 0   ;;  %v1220_v6 = vmov (!%p414_p10), 0.0  }
  0x14   : > { %417 = sbr.rel (%p414_p10) target bundleno = 1341 (0x53d), region = 68  ;;  %1052 = vmatprep.subr.bf16.mxu1 (!%p414_p10), %v1218_v3  ;;  %1064 = vmatprep.subr.bf16.mxu0 (!%p414_p10), %v1218_v3  ;;  %614 = vst.msk [vmem:[#allocation3] sm:$0xff] (!%p414_p10), %vm507_vm0, %v1220_v6  ;;  %s1502_s0 = sld [smem:[#allocation8_spill]] (!%p414_p10)  ;;  %v978_v9 = vld [vmem:[%s1484_s3] ss:$0 sm:$0xff] (!%p414_p10)  ;;  %v617_v22 = vld [vmem:[%s1487_s6 + $0x8] sm:$0xff] (!%p414_p10) }
  0x15   : > { %1019 = vmatprep.mubr.msk.f32.mxu1 (!%p414_p10), %vm1219_vm1, %v1220_v6  ;;  %1049 = vmatprep.mubr.msk.f32.mxu0 (!%p414_p10), %vm1219_vm1, %v1220_v6  ;;  %s1503_s1 = sld [smem:[#allocation9_spill]] (!%p414_p10)  ;;  %v616_v21 = vld [vmem:[%s1487_s6] sm:$0xff] (!%p414_p10)  ;;  %v618_v24 = vld [vmem:[%s1487_s6 + $0x10] sm:$0xff] (!%p414_p10)  ;;  %v619_v25 = vld [vmem:[%s1487_s6 + $0x18] sm:$0xff] (!%p414_p10)  ;;  %vm711_vm2 = vcmask (!%p414_p10), 523264   ;;  %s989_s30 = sshll.u32 (!%p414_p10), %s1208_s24, 7 }
  0x16   : > { %v1059_v23 = vpack.c.bf16 (!%p414_p10), %v617_v22, %v616_v21  ;;  %v1062_v26 = vpack.c.bf16 (!%p414_p10), %v619_v25, %v618_v24  ;;  %v703_v27 = vld [vmem:[%s1489_s8] sm:$0xff] (!%p414_p10)  ;;  %v704_v28 = vld [vmem:[%s1489_s8 + $0x8] sm:$0xff] (!%p414_p10)  ;;  %v705_v29 = vld [vmem:[%s1489_s8 + $0x10] sm:$0xff] (!%p414_p10) }
  0x17   : > { %v1065_v30 = vpack.c.bf16 (!%p414_p10), %v704_v28, %v703_v27  ;;  %v706_v31 = vld [vmem:[%s1489_s8 + $0x18] sm:$0xff] (!%p414_p10)  ;;  %v707_v33 = vld [vmem:[%s1489_s8 + $0x20] sm:$0xff] (!%p414_p10)  ;;  %v708_v34 = vld [vmem:[%s1489_s8 + $0x28] sm:$0xff] (!%p414_p10) }
  0x18   : > { %v1068_v32 = vpack.c.bf16 (!%p414_p10), %v706_v31, %v705_v29  ;;  %v1071_v35 = vpack.c.bf16 (!%p414_p10), %v708_v34, %v707_v33  ;;  %v980_v40 = vld [vmem:[%s1485_s4] ss:$0 sm:$0xff] (!%p414_p10)  ;;  %v709_v46 = vld [vmem:[%s1489_s8 + $0x30] sm:$0xff] (!%p414_p10)  ;;  %v710_v47 = vld [vmem:[%s1489_s8 + $0x38] sm:$0xff] (!%p414_p10) }
  0x19   : > { %v496_v0 = vld [vmem:[%s1501_s2] sm:$0xff] (!%p414_p10)  ;;  %v497_v1 = vld [vmem:[%s1501_s2 + $0x8] sm:$0xff] (!%p414_p10)  ;;  %v498_v2 = vld [vmem:[%s1501_s2 + $0x10] sm:$0xff] (!%p414_p10)  ;;  %1066 = vmatpush3.bf16.msra.mxu0 (!%p414_p10), %v1065_v30  ;;  %v1074_v48 = vpack.c.bf16 (!%p414_p10), %v710_v47, %v709_v46 }
  0x1a   : > { %v1053_v4 = vpack.c.bf16 (!%p414_p10), %v497_v1, %v496_v0  ;;  %v499_v5 = vld [vmem:[%s1501_s2 + $0x18] sm:$0xff] (!%p414_p10)  ;;  %1067 = vmatprep.subr.bf16.mxu0 (!%p414_p10), %v1218_v3  ;;  %v981_v42 = vld [vmem:[%s1486_s5] ss:$0 sm:$0xff] (!%p414_p10)  ;;  %s467_s2 = sand.u32 (!%p414_p10), 1, %s1200_s22  }
  0x1b   : > { %v1056_v7 = vpack.c.bf16 %v499_v5, %v498_v2  ;;  %s471_s17 = scalar_select %p470_p11, %s1208_s24, 1  ;;  %v982_v49 = vld [vmem:[%s1488_s7] ss:$0 sm:$0xff]  ;;  %v702_v54 = vld [vmem:[#allocation3] sm:$0xff] }
  0x1c   : > { %1054 = vmatpush3.bf16.msra.mxu1 %v1053_v4  ;;  %v985_v58 = vld [vmem:[%s1490_s9] ss:$0 sm:$0xff]  ;;  %s975_s29 = sshll.u32 %s467_s2, 3  ;;  %s833_s19 = scalar_lea.sflag [#allocation5], %s467_s2 }
  0x1d   : > { %1055 = vmatprep.subr.bf16.mxu1 %v1218_v3  ;;  %s976_s18 = sshll.u32 %s471_s17, 3  ;;  %1069 = vmatpush3.bf16.msra.mxu0 %v1068_v32  ;;  %s1221_s24 = smov [#allocation4]  }
  0x1e   : > { %s473_s27 = scalar_lea.vmem %s1502_s0, %s976_s18  ;;  %s477_s14 = scalar_lea.vmem %s1503_s1, %s976_s18  ;;  %1070 = vmatprep.subr.bf16.mxu0 %v1218_v3 }
  0x1f   : > { %v495_v8 = vld [vmem:[%s473_s27] sm:$0xff]  ;;  %s1433_s1 = scalar_lea.hbm %s1493_s12, %s989_s30 }
  0x20   : > { %1057 = vmatpush3.bf16.msra.mxu1 %v1056_v7  ;;  %v581_v11 = vld [vmem:[%s477_s14] sm:$0xff]  ;;  %s469_s14 = scalar_lea.vmem [#allocation4], %s975_s29  ;;  %s1142_s29 = sshll.u32 %s1221_s24, 4  ;;  %s1143_s29 = int_to_ptr.vmem [resolvable:$false] %s1142_s29 }
  0x21   : > { %1058 = vmatprep.subr.bf16.mxu1 %v1218_v3  ;;  %1072 = vmatpush3.bf16.msra.mxu0 %v1071_v35  ;;  %s846_s17 = sshll.u32 %s469_s14, 4  ;;  %s1144_s27 = scalar_lea.vmem %s1143_s29, 256  ;;  %s1435_s17 = int_to_ptr.vmem [resolvable:$true] %s846_s17 }
  0x22   : > { %1073 = vmatprep.subr.bf16.mxu0 %v1218_v3  ;;  %s1138_s20 = scalar_lea.vmem %s1435_s17, 128  ;;  %p1145_p1 = scmp.lt.s32.totalorder %s1435_s17, %s1143_s29 }
  0x23   : > { %1020 = vmatmul.mubr.msk.f32.vlgmr.msra.gmra.mrb[0].mxu1 %vm507_vm0, %v495_v8  ;;  %v986_v8 = vld [vmem:[%s1491_s10] ss:$0 sm:$0xff]  ;;  %p1139_p12 = scmp.ne.s32.totalorder %s1435_s17, %s1138_s20  ;;  %p1146_p2 = scmp.lt.s32.totalorder %s1144_s27, %s1138_s20 }
  0x24   : > { %1030 = vmatprep.mubr.msk.f32.mxu1 %vm1219_vm1, %v1220_v6  ;;  %1060 = vmatpush3.bf16.msra.mxu1 %v1059_v23 }
  0x25   : > { %1061 = vmatprep.subr.bf16.mxu1 %v1218_v3  ;;  %1075 = vmatpush3.bf16.msra.mxu0 %v1074_v48  ;;  %p1140_p13 = pnand %p1139_p12, %p1327_p4  ;;  %p1147_p3 = por %p1146_p2, %p1145_p1 }
  0x27   : > { %p1141_p0 = pneg %p1140_p13 }
  0x28   : > { %1063 = vmatpush3.bf16.msra.mxu1 %v1062_v26 }
  0x29   : > { %p1148_p5 = pnand %p1147_p3, %p1141_p0 }
  0xf6   : > { %v577_v10 = vpop.f32.mrb[0].mxu1 }
  0xf7   : > { %v578_v12 = vadd.f32 %v978_v9, %v577_v10  ;;  %v1021_v13 = vpop.f32.mrb[1].mxu1  ;;  %v987_v10 = vld [vmem:[%s1492_s11] ss:$0 sm:$0xff] }
  0xf9   : > { %v582_v14 = vadd.f32 %v581_v11, %v578_v12 }
  0xfb   : > { %v583_v15 = vsel %vm507_vm0, %v582_v14, 0.0 }
  0xfc   : > { %584 = vadd.xlane.f32.xlu0 %v583_v15 }
 0x189   : > { %v585_v16 = vpop.xlane.xlu0 %584 }
 0x18a   : > { %v587_v17 = vmul.f32 0.03125, %v585_v16 }
 0x18c   : > { %v588_v18 = vsub.f32 %v582_v14, %v587_v17 }
 0x18e   : > { %v589_v19 = vmul.f32 %v588_v18, %v588_v18 }
 0x190   : > { %v590_v20 = vsel %vm507_vm0, %v589_v19, 0.0 }
 0x191   : > { %591 = vadd.xlane.f32.xlu0 %v590_v20 }
 0x21e   : > { %v592_v36 = vpop.xlane.xlu0 %591 }
 0x21f   : > { %v593_v37 = vmul.f32 0.03125, %v592_v36 }
 0x221   : > { %v594_v38 = vadd.f32 1e-05, %v593_v37 }
 0x223   : > { %1134 = vrsqrt.f32 %v594_v38 }
 0x22d   : > { %v1135_v39 = vpop.eup %1134 }
 0x22e   : > { %v596_v41 = vmul.f32 %v1135_v39, %v588_v18 }
 0x230   : > { %v604_v43 = vmul.f32 %v980_v40, %v596_v41 }
 0x232   : > { %v612_v44 = vadd.f32 %v981_v42, %v604_v43 }
 0x234   : > { %613 = vst.msk [vmem:[#allocation2] sm:$0xff] %vm507_vm0, %v612_v44 }
 0x23b   : > { %v615_v45 = vld [vmem:[#allocation2] sm:$0xff] }
 0x23c   : > { %1031 = vmatmul.mubr.msk.f32.vlgmr.msra.gmra.mrb[2].mxu1 %vm507_vm0, %v615_v45 }
 0x30f   : > { %v697_v50 = vpop.f32.mrb[2].mxu1 }
 0x310   : > { %v698_v51 = vadd.f32 %v982_v49, %v697_v50  ;;  %v1032_v52 = vpop.f32.mrb[3].mxu1 }
 0x312   : > { %v701_v53 = vmax.f32 %v698_v51, 0.0 }
 0x314   : > { %1050 = vmatmul.mubr.msk.f32.vlgmr.msra.gmra.mrb[0].mxu0 %vm711_vm2, %v701_v53 }
 0x3e7   : > { %v781_v55 = vpop.f32.mrb[0].mxu0 }
 0x3e8   : > { %v785_v56 = vadd.f32 %v781_v55, %v702_v54  ;;  %v1051_v57 = vpop.f32.mrb[1].mxu0 }
 0x3ea   : > { %786 = vst.msk [vmem:[#allocation3] sm:$0xff] %vm507_vm0, %v785_v56 }
 0x3f1   : > { %v790_v59 = vld [vmem:[#allocation3] sm:$0xff] }
 0x3f2   : > { %v798_v60 = vadd.f32 %v985_v58, %v790_v59 }
 0x3f4   : > { %v800_v61 = vadd.f32 %v798_v60, %v615_v45 }
 0x3f6   : > { %v801_v62 = vsel %vm507_vm0, %v800_v61, 0.0 }
 0x3f7   : > { %802 = vadd.xlane.f32.xlu1 %v801_v62 }
 0x484   : > { %v803_v63 = vpop.xlane.xlu1 %802 }
 0x485   : > { %v805_v0 = vmul.f32 0.03125, %v803_v63 }
 0x487   : > { %v806_v1 = vsub.f32 %v800_v61, %v805_v0 }
 0x489   : > { %v807_v2 = vmul.f32 %v806_v1, %v806_v1 }
 0x48b   : > { %v808_v3 = vsel %vm507_vm0, %v807_v2, 0.0 }
 0x48c   : > { %809 = vadd.xlane.f32.xlu1 %v808_v3 }
 0x519   : > { %v810_v4 = vpop.xlane.xlu1 %809 }
 0x51a   : > { %v811_v5 = vmul.f32 0.03125, %v810_v4 }
 0x51c   : > { %v812_v6 = vadd.f32 1e-05, %v811_v5 }
 0x51e   : > { %1136 = vrsqrt.f32 %v812_v6 }
 0x528   : > { %v1137_v7 = vpop.eup %1136 }
 0x529   : > { %v814_v9 = vmul.f32 %v1137_v7, %v806_v1 }
 0x52b   : > { %v822_v11 = vmul.f32 %v986_v8, %v814_v9 }
 0x52d   : > { %v830_v12 = vadd.f32 %v987_v10, %v822_v11 }
 0x52f   : > { %831 = vst.msk [vmem:[%s469_s14] sm:$0xff] %vm507_vm0, %v830_v12 }
 0x530   : > { %1151 = shalt.err (!%p1148_p5)
}
 0x531   : > { %s1152_s0 = scalar_lea.hbm %s1433_s1, 128  ;;  %s1156_s30 = scalar_lea.hbm %s1493_s12, 256 }
 0x532   : > { %p1153_p6 = scmp.ne.s32.totalorder %s1433_s1, %s1152_s0  ;;  %p1157_p10 = scmp.lt.u32.totalorder %s1433_s1, %s1493_s12 }
 0x533   : > { %p1158_p11 = scmp.lt.u32.totalorder %s1156_s30, %s1152_s0  ;;  %p1160_p13 = scmp.lt.u32.totalorder %s1152_s0, %s1433_s1 }
 0x534   : > { %p1154_p7 = pnand %p1153_p6, %p1327_p4 }
 0x535   : > { %p1159_p12 = por %p1158_p11, %p1157_p10 }
 0x536   : > { %p1155_p9 = pneg %p1154_p7 }
 0x537   : > { %p1161_p0 = por %p1160_p13, %p1159_p12 }
 0x539   : > { %p1162_p1 = pnand %p1161_p0, %p1155_p9 }
 0x53b   : > { %1165 = shalt.err (!%p1162_p1)
}
 0x53c   : > { %1076 = dma.vmem_to_hbm [thread:$0]  (%p1327_p4), %s1435_s17, 128, %s1433_s1, %s833_s19  }
 0x53d PF: > { %p1082_p2 = scmp.ge.s32.totalorder %s1216_s26, 2  ;;  %s858_s20 = sand.u32 1, %s1196_s21  }
 0x53e   : > { %s859_s24 = scalar_lea.sflag [#allocation5], %s858_s20 }
 0x53f   : > { %p1079_p3 = pnand %p1082_p2, %p1334_p8 }
 0x541   : > { %1191 = dma.done.wait (!%p1079_p3), %s859_s24, 128  }
 0x542   : > { %1193 = vsyncadd (!%p1079_p3), %s859_s24, 4294967168  ;;  %s25_s26 = sadd.s32 1, %s1216_s26   ;;  %s1504_s13 = sld [smem:[#allocation7_spill]] }
 0x543   : > { %p22_p5 = scmp.ge.s32.totalorder %s25_s26, 4   ;;  %s1505_s21 = smov %s1200_s22 }
 0x544   : > { %s1506_s22 = smov %s1204_s23  ;;  %s1507_s23 = smov %s1340_s16 }
 0x545   : > { %s1508_s24 = smov %s1212_s25  ;;  %24 = sbr.rel (!%p22_p5) target bundleno = 8 (0x8), region = 123 }
 0x548   : > { %s1509_s25 = smov %s1504_s13 }
 0x54c   :  { %864 = vsyncpa [#allocation5], 1 }
 0x54d   :  { %866 = vsyncpa [#allocation5 + $0x1], 1 }

</bundles_post_ra>
